<compile_context>
chip_gen: v7x
topology: tpu7x:2x2x1
jax: 0.10.0
libtpu: 0.0.40
codegen_flags: <defaults>
</compile_context>

<pallas_src>
import jax
import jax.numpy as jnp
from jax import lax
from jax.experimental import pallas as pl
from jax.experimental.pallas import tpu as pltpu

LANE = 128                     # lane width: feature dims padded to multiples of this
MATMUL_DTYPE = jnp.bfloat16    # MXU input dtype (f32 accumulation inside the kernel)


def _round_up(n, m):
    return ((n + m - 1) // m) * m


def _choose_batch_tile(batch, tb):
    """Batch tile: multiple of 16 (bf16 (16,128) vreg packing), >=2 tiles when
    possible so dimension_semantics=("parallel",) can use both v7x TensorCores."""
    tb = max(16, _round_up(min(tb, batch), 16))
    b_pad = _round_up(batch, tb)
    if b_pad // tb < 2 and b_pad >= 32:
        tb = _round_up(b_pad // 2, 16)
        b_pad = _round_up(batch, tb)
    return tb, b_pad


# -----------------------------------------------------------------------------
# Fused kernel: EmbeddingBag(mean) + (Linear + folded-BN + ReLU) x num_layers.
# -----------------------------------------------------------------------------
def make_fused_kernel(num_layers, matmul_dtype):
    def kernel(ids_ref, cnt_ref, emb_ref, *args):
        *wb_refs, o_ref = args
        tb, seq_len = ids_ref.shape
        vocab, _ = emb_ref.shape

        ids = ids_ref[...]                          # (tb, L) int32
        cnt = cnt_ref[...]                          # (tb, 1) int32

        # Bag-membership count matrix S[b, v] = #{ j < cnt[b] : ids[b, j] == v }.
        # Pure full-vreg VPU work; no per-row DMAs or dynamic gathers.
        v_iota = lax.broadcasted_iota(jnp.int32, (tb, vocab), 1)
        s = jnp.zeros((tb, vocab), jnp.float32)
        for j in range(seq_len):                    # static unroll; L is small
            hit = ids[:, j:j + 1] == v_iota         # (tb, vocab) bool
            s = s + (hit & (j < cnt)).astype(jnp.float32)

        # EmbeddingBag sum as one MXU matmul against the VMEM-resident bf16 table,
        # accumulated in f32.  The 1/count (mean) scaling is applied once per bag
        # afterwards (deferred scaling).
        summed = jnp.dot(s.astype(matmul_dtype), emb_ref[...],
                         preferred_element_type=jnp.float32)        # (tb, E_pad) f32
        inv = 1.0 / jnp.maximum(cnt, 1).astype(jnp.float32)          # (tb, 1)
        h = (summed * inv).astype(matmul_dtype)

        # Fused Linear (+ folded inference-mode BatchNorm) + ReLU stack.
        # bf16 MXU inputs, f32 accumulation, bias+ReLU in f32 (v5e has no bf16 VPU).
        for l in range(num_layers):
            w_ref = wb_refs[2 * l]
            b_ref = wb_refs[2 * l + 1]
            z = jnp.dot(h, w_ref[...], preferred_element_type=jnp.float32)
            z = jnp.maximum(z + b_ref[...], 0.0)
            # Intermediate activations deliberately kept bf16 between layers.
            h = z if l == num_layers - 1 else z.astype(matmul_dtype)

        o_ref[...] = h.astype(o_ref.dtype)

    return kernel


def fused_forward(ids_pad, counts, emb_p, weights, biases, *, tb=256,
                  matmul_dtype=MATMUL_DTYPE):
    """ids_pad: (B, L) int32, counts: (B,) int32, emb_p: (V, E_pad) bf16,
    weights[l]: (in_pad, out_pad) bf16, biases[l]: (1, out_pad) f32."""
    B, L = ids_pad.shape
    V, e_pad = emb_p.shape
    h_pad = weights[-1].shape[1]
    n = len(weights)

    tbe, b_pad = _choose_batch_tile(B, tb)
    ids_p = jnp.pad(ids_pad, ((0, b_pad - B), (0, 0)))
    cnt_p = jnp.pad(counts, (0, b_pad - B)).reshape(b_pad, 1).astype(jnp.int32)

    in_specs = [
        pl.BlockSpec((tbe, L), lambda i: (i, 0)),
        pl.BlockSpec((tbe, 1), lambda i: (i, 0)),
        # Constant index_map -> embedding table stays VMEM-resident across tiles.
        pl.BlockSpec((V, e_pad), lambda i: (0, 0)),
    ]
    operands = [ids_p, cnt_p, emb_p]
    for w, b in zip(weights, biases):
        # Constant index_map -> weight/bias blocks stay VMEM-resident across tiles.
        in_specs.append(pl.BlockSpec(w.shape, lambda i: (0, 0)))
        in_specs.append(pl.BlockSpec(b.shape, lambda i: (0, 0)))
        operands += [w, b]

    flops = 2 * b_pad * (V * e_pad
                         + sum(int(w.shape[0]) * int(w.shape[1]) for w in weights))
    bytes_accessed = int(sum(int(x.size) * x.dtype.itemsize for x in operands)
                         + b_pad * h_pad * 4)

    out = pl.pallas_call(
        make_fused_kernel(n, matmul_dtype),
        out_shape=jax.ShapeDtypeStruct((b_pad, h_pad), jnp.float32),
        grid_spec=pltpu.PrefetchScalarGridSpec(
            num_scalar_prefetch=0,
            grid=(b_pad // tbe,),
            in_specs=in_specs,
            out_specs=pl.BlockSpec((tbe, h_pad), lambda i: (i, 0)),
        ),
        compiler_params=pltpu.CompilerParams(
            # Single batch-tile axis, >=2 tiles when possible -> v7x megacore split.
            dimension_semantics=("parallel",),
            # Safe on all of v5e/v6e (128 MiB) and v7x (64 MiB physical VMEM).
            vmem_limit_bytes=32 * 1024 * 1024,
        ),
        cost_estimate=pl.CostEstimate(flops=flops, transcendentals=0,
                                      bytes_accessed=bytes_accessed),
    )(*operands)
    return out[:B]


# -----------------------------------------------------------------------------
# Host-side parameter / input preparation (pure data plumbing, not kernels).
# -----------------------------------------------------------------------------
def ragged_to_padded(ids, offsets, max_len):
    """torch.EmbeddingBag-style (flat ids, offsets) -> padded (B, max_len) ids + counts.
    Counts are clamped to max_len so truncated bags are still a proper mean over
    the ids that were kept."""
    num_ids = ids.shape[0]
    offsets = offsets.astype(jnp.int32)
    ends = jnp.concatenate([offsets[1:], jnp.array([num_ids], dtype=jnp.int32)])
    counts = jnp.minimum(ends - offsets, max_len)
    pos = offsets[:, None] + jnp.arange(max_len, dtype=jnp.int32)[None, :]
    valid = jnp.arange(max_len, dtype=jnp.int32)[None, :] < counts[:, None]
    gathered = jnp.take(ids, jnp.clip(pos, 0, num_ids - 1), axis=0).astype(jnp.int32)
    ids_pad = jnp.where(valid, gathered, 0)
    return ids_pad, counts


def fold_batchnorm(w, b, gamma, beta, mean, var, eps=1e-5):
    # Inference-mode BatchNorm1d folded into the preceding Linear (exact).
    s = gamma * jax.lax.rsqrt(var + eps)
    return w * s[None, :], (b - mean) * s + beta


def prepare_params(emb_table, blocks, matmul_dtype=MATMUL_DTYPE):
    """Fold BN into the Linears, zero-pad feature dims to LANE multiples and cast
    the embedding table / weights to bf16 (halves resident VMEM and gather bytes)."""
    V, E = emb_table.shape
    e_pad = _round_up(E, LANE)
    emb_p = jnp.pad(emb_table, ((0, 0), (0, e_pad - E))).astype(matmul_dtype)
    weights, biases = [], []
    in_pad = e_pad
    for (w, b, gamma, beta, mean, var) in blocks:
        inc, outc = w.shape
        out_pad = _round_up(outc, LANE)
        wf, bf = fold_batchnorm(w, b, gamma, beta, mean, var)
        weights.append(
            jnp.pad(wf, ((0, in_pad - inc), (0, out_pad - outc))).astype(matmul_dtype))
        biases.append(
            jnp.pad(bf, (0, out_pad - outc)).reshape(1, -1).astype(jnp.float32))
        in_pad = out_pad
    return emb_p, weights, biases


def text_model_forward(text_data, emb_table, blocks, *, max_len, tb=256,
                       matmul_dtype=MATMUL_DTYPE):
    """Pallas equivalent of TextModel.forward (inference mode)."""
    ids_pad, counts = ragged_to_padded(text_data["ids"], text_data["offsets"], max_len)
    emb_p, weights, biases = prepare_params(emb_table, blocks, matmul_dtype)
    out = fused_forward(ids_pad, counts, emb_p, weights, biases, tb=tb,
                        matmul_dtype=matmul_dtype)
    hidden = blocks[-1][0].shape[1]
    return out[:, :hidden]


# -----------------------------------------------------------------------------
# Synthetic parameters + pure-JAX references.
# -----------------------------------------------------------------------------
def init_params(key, vocab_size, embedding_size, hidden_size, hidden_layers):
    # Linear weights stored as (in, out) (transposed vs. torch's (out, in)).
    n_blocks = hidden_layers + 1
    keys = jax.random.split(key, 1 + n_blocks)
    emb = 0.5 * jax.random.normal(keys[0], (vocab_size, embedding_size), jnp.float32)
    in_dims = [embedding_size] + [hidden_size] * hidden_layers
    blocks = []
    for l, inc in enumerate(in_dims):
        k = jax.random.split(keys[1 + l], 6)
        w = jax.random.normal(k[0], (inc, hidden_size), jnp.float32) / jnp.sqrt(inc)
        b = 0.02 * jax.random.normal(k[1], (hidden_size,), jnp.float32)
        gamma = 1.0 + 0.1 * jax.random.normal(k[2], (hidden_size,), jnp.float32)
        beta = 0.05 * jax.random.normal(k[3], (hidden_size,), jnp.float32)
        mean = 0.05 * jax.random.normal(k[4], (hidden_size,), jnp.float32)
        var = 0.7 + 0.3 * jnp.abs(jax.random.normal(k[5], (hidden_size,), jnp.float32))
        blocks.append((w, b, gamma, beta, mean, var))
    return emb, blocks


def reference_pooled_from(ids_pad, counts, table_f32):
    L = ids_pad.shape[1]
    valid = (jnp.arange(L)[None, :] < counts[:, None]).astype(jnp.float32)
    rows = table_f32[ids_pad]                                       # (B, L, E)
    summed = jnp.einsum("bl,ble->be", valid, rows)
    return summed / jnp.maximum(counts, 1)[:, None].astype(jnp.float32)


def reference_forward_matched(ids_pad, counts, emb_p, weights, biases,
                              matmul_dtype=MATMUL_DTYPE):
    # Mirrors the kernel's precision choices: bf16 table, f32 pooled accumulation,
    # bf16 MXU inputs with f32 accumulation, bf16 intermediate activations.
    pooled = reference_pooled_from(ids_pad, counts, emb_p.astype(jnp.float32))
    h = pooled.astype(matmul_dtype)
    z = pooled
    for w, b in zip(weights, biases):
        z = jnp.dot(h, w, preferred_element_type=jnp.float32)
        z = jnp.maximum(z + b, 0.0)
        h = z.astype(matmul_dtype)
    return z


def reference_forward_f32(ids_pad, counts, emb_table, blocks, eps=1e-5):
    # Full-f32 eval-mode reference (torch semantics with running BN stats).
    x = reference_pooled_from(ids_pad, counts, emb_table)
    for (w, b, gamma, beta, mean, var) in blocks:
        z = x @ w + b
        z = (z - mean) * jax.lax.rsqrt(var + eps) * gamma + beta
        x = jnp.maximum(z, 0.0)
    return x


if __name__ == "__main__":
    VOCAB, EMB, HIDDEN, HIDDEN_LAYERS = 512, 96, 80, 3       # small TextModel config
    B, MAX_LEN = 32, 12

    key = jax.random.PRNGKey(0)
    k_param, k_ids = jax.random.split(key, 2)

    emb_table, blocks = init_params(k_param, VOCAB, EMB, HIDDEN, HIDDEN_LAYERS)

    # Ragged bag-of-words input in torch EmbeddingBag format: flat ids + bag offsets.
    lengths = jnp.array([3 + ((7 * i) % 10) for i in range(B)], dtype=jnp.int32)
    offsets = jnp.concatenate(
        [jnp.zeros((1,), jnp.int32), jnp.cumsum(lengths)[:-1].astype(jnp.int32)])
    total_ids = int(lengths.sum())                           # deterministic
    ids = jax.random.randint(k_ids, (total_ids,), 0, VOCAB, dtype=jnp.int32)
    text_data = {"ids": ids, "offsets": offsets}

    out = text_model_forward(text_data, emb_table, blocks, max_len=MAX_LEN)
    out = jax.block_until_ready(out)
    assert out.shape == (B, HIDDEN)

    # ---- correctness checks -------------------------------------------------
    ids_pad, counts = ragged_to_padded(ids, offsets, MAX_LEN)
    emb_p, weights_p, biases_p = prepare_params(emb_table, blocks)

    # 1) Fused kernel vs. precision-matched reference (same bf16/f32 arithmetic).
    matched = reference_forward_matched(ids_pad, counts, emb_p,
                                        weights_p, biases_p)[:, :HIDDEN]
    assert jnp.allclose(out, matched, atol=2e-3, rtol=2e-3)

    # 2) End-to-end vs. full-f32 eval-mode reference (bf16 table/MXU tolerance).
    ref = reference_forward_f32(ids_pad, counts, emb_table, blocks)
    assert jnp.allclose(out, ref, atol=5e-2, rtol=5e-2)

    print("KERNEL_OK")
</pallas_src>

<mosaic_0001>
module attributes {stable_mosaic.version = 11 : i64} {
  func.func @kernel(%arg0: i32, %arg1: memref<16x12xi32, #tpu.memory_space<vmem>>, %arg2: memref<16x1xi32, #tpu.memory_space<vmem>>, %arg3: memref<512x128xbf16, #tpu.memory_space<vmem>>, %arg4: memref<128x128xbf16, #tpu.memory_space<vmem>>, %arg5: memref<1x128xf32, #tpu.memory_space<vmem>>, %arg6: memref<128x128xbf16, #tpu.memory_space<vmem>>, %arg7: memref<1x128xf32, #tpu.memory_space<vmem>>, %arg8: memref<128x128xbf16, #tpu.memory_space<vmem>>, %arg9: memref<1x128xf32, #tpu.memory_space<vmem>>, %arg10: memref<128x128xbf16, #tpu.memory_space<vmem>>, %arg11: memref<1x128xf32, #tpu.memory_space<vmem>>, %arg12: memref<16x128xf32, #tpu.memory_space<vmem>>) attributes {dimension_semantics = [#tpu.dimension_semantics<parallel>], iteration_bounds = array<i64: 2>, scalar_prefetch = 0 : i64, scratch_operands = 0 : i64, tpu.core_type = #tpu.core_type<tc>, window_params = [{transform_indices = @transform_0, window_bounds = array<i64: 16, 12>}, {transform_indices = @transform_1, window_bounds = array<i64: 16, 1>}, {pipeline_mode = #tpu.pipeline_mode<synchronous>, transform_indices = @transform_2, window_bounds = array<i64: 512, 128>}, {pipeline_mode = #tpu.pipeline_mode<synchronous>, transform_indices = @transform_3, window_bounds = array<i64: 128, 128>}, {pipeline_mode = #tpu.pipeline_mode<synchronous>, transform_indices = @transform_4, window_bounds = array<i64: 1, 128>}, {pipeline_mode = #tpu.pipeline_mode<synchronous>, transform_indices = @transform_5, window_bounds = array<i64: 128, 128>}, {pipeline_mode = #tpu.pipeline_mode<synchronous>, transform_indices = @transform_6, window_bounds = array<i64: 1, 128>}, {pipeline_mode = #tpu.pipeline_mode<synchronous>, transform_indices = @transform_7, window_bounds = array<i64: 128, 128>}, {pipeline_mode = #tpu.pipeline_mode<synchronous>, transform_indices = @transform_8, window_bounds = array<i64: 1, 128>}, {pipeline_mode = #tpu.pipeline_mode<synchronous>, transform_indices = @transform_9, window_bounds = array<i64: 128, 128>}, {pipeline_mode = #tpu.pipeline_mode<synchronous>, transform_indices = @transform_10, window_bounds = array<i64: 1, 128>}, {transform_indices = @transform_11, window_bounds = array<i64: 16, 128>}]} {
    %c0 = arith.constant 0 : index
    %c0_0 = arith.constant 0 : index
    %0 = vector.load %arg1[%c0, %c0_0] : memref<16x12xi32, #tpu.memory_space<vmem>>, vector<16x12xi32>
    %c0_1 = arith.constant 0 : index
    %c0_2 = arith.constant 0 : index
    %1 = vector.load %arg2[%c0_1, %c0_2] : memref<16x1xi32, #tpu.memory_space<vmem>>, vector<16x1xi32>
    %2 = tpu.iota {dimensions = array<i32: 1>} : vector<16x512xi32>
    %cst = arith.constant 0.000000e+00 : f32
    %3 = vector.broadcast %cst : f32 to vector<16x512xf32>
    %4 = vector.extract_strided_slice %0 {offsets = [0, 0], sizes = [16, 1], strides = [1, 1]} : vector<16x12xi32> to vector<16x1xi32>
    %5 = vector.broadcast %4 : vector<16x1xi32> to vector<16x512xi32>
    %6 = arith.cmpi eq, %5, %2 : vector<16x512xi32>
    %c0_i32 = arith.constant 0 : i32
    %7 = vector.broadcast %c0_i32 : i32 to vector<16x1xi32>
    %8 = arith.cmpi sgt, %1, %7 : vector<16x1xi32>
    %9 = vector.broadcast %8 : vector<16x1xi1> to vector<16x512xi1>
    %10 = arith.andi %6, %9 : vector<16x512xi1>
    %11 = arith.extui %10 : vector<16x512xi1> to vector<16x512xi32>
    %12 = arith.sitofp %11 : vector<16x512xi32> to vector<16x512xf32>
    %13 = arith.addf %3, %12 : vector<16x512xf32>
    %14 = vector.extract_strided_slice %0 {offsets = [0, 1], sizes = [16, 1], strides = [1, 1]} : vector<16x12xi32> to vector<16x1xi32>
    %15 = vector.broadcast %14 : vector<16x1xi32> to vector<16x512xi32>
    %16 = arith.cmpi eq, %15, %2 : vector<16x512xi32>
    %c1_i32 = arith.constant 1 : i32
    %17 = vector.broadcast %c1_i32 : i32 to vector<16x1xi32>
    %18 = arith.cmpi sgt, %1, %17 : vector<16x1xi32>
    %19 = vector.broadcast %18 : vector<16x1xi1> to vector<16x512xi1>
    %20 = arith.andi %16, %19 : vector<16x512xi1>
    %21 = arith.extui %20 : vector<16x512xi1> to vector<16x512xi32>
    %22 = arith.sitofp %21 : vector<16x512xi32> to vector<16x512xf32>
    %23 = arith.addf %13, %22 : vector<16x512xf32>
    %24 = vector.extract_strided_slice %0 {offsets = [0, 2], sizes = [16, 1], strides = [1, 1]} : vector<16x12xi32> to vector<16x1xi32>
    %25 = vector.broadcast %24 : vector<16x1xi32> to vector<16x512xi32>
    %26 = arith.cmpi eq, %25, %2 : vector<16x512xi32>
    %c2_i32 = arith.constant 2 : i32
    %27 = vector.broadcast %c2_i32 : i32 to vector<16x1xi32>
    %28 = arith.cmpi sgt, %1, %27 : vector<16x1xi32>
    %29 = vector.broadcast %28 : vector<16x1xi1> to vector<16x512xi1>
    %30 = arith.andi %26, %29 : vector<16x512xi1>
    %31 = arith.extui %30 : vector<16x512xi1> to vector<16x512xi32>
    %32 = arith.sitofp %31 : vector<16x512xi32> to vector<16x512xf32>
    %33 = arith.addf %23, %32 : vector<16x512xf32>
    %34 = vector.extract_strided_slice %0 {offsets = [0, 3], sizes = [16, 1], strides = [1, 1]} : vector<16x12xi32> to vector<16x1xi32>
    %35 = vector.broadcast %34 : vector<16x1xi32> to vector<16x512xi32>
    %36 = arith.cmpi eq, %35, %2 : vector<16x512xi32>
    %c3_i32 = arith.constant 3 : i32
    %37 = vector.broadcast %c3_i32 : i32 to vector<16x1xi32>
    %38 = arith.cmpi sgt, %1, %37 : vector<16x1xi32>
    %39 = vector.broadcast %38 : vector<16x1xi1> to vector<16x512xi1>
    %40 = arith.andi %36, %39 : vector<16x512xi1>
    %41 = arith.extui %40 : vector<16x512xi1> to vector<16x512xi32>
    %42 = arith.sitofp %41 : vector<16x512xi32> to vector<16x512xf32>
    %43 = arith.addf %33, %42 : vector<16x512xf32>
    %44 = vector.extract_strided_slice %0 {offsets = [0, 4], sizes = [16, 1], strides = [1, 1]} : vector<16x12xi32> to vector<16x1xi32>
    %45 = vector.broadcast %44 : vector<16x1xi32> to vector<16x512xi32>
    %46 = arith.cmpi eq, %45, %2 : vector<16x512xi32>
    %c4_i32 = arith.constant 4 : i32
    %47 = vector.broadcast %c4_i32 : i32 to vector<16x1xi32>
    %48 = arith.cmpi sgt, %1, %47 : vector<16x1xi32>
    %49 = vector.broadcast %48 : vector<16x1xi1> to vector<16x512xi1>
    %50 = arith.andi %46, %49 : vector<16x512xi1>
    %51 = arith.extui %50 : vector<16x512xi1> to vector<16x512xi32>
    %52 = arith.sitofp %51 : vector<16x512xi32> to vector<16x512xf32>
    %53 = arith.addf %43, %52 : vector<16x512xf32>
    %54 = vector.extract_strided_slice %0 {offsets = [0, 5], sizes = [16, 1], strides = [1, 1]} : vector<16x12xi32> to vector<16x1xi32>
    %55 = vector.broadcast %54 : vector<16x1xi32> to vector<16x512xi32>
    %56 = arith.cmpi eq, %55, %2 : vector<16x512xi32>
    %c5_i32 = arith.constant 5 : i32
    %57 = vector.broadcast %c5_i32 : i32 to vector<16x1xi32>
    %58 = arith.cmpi sgt, %1, %57 : vector<16x1xi32>
    %59 = vector.broadcast %58 : vector<16x1xi1> to vector<16x512xi1>
    %60 = arith.andi %56, %59 : vector<16x512xi1>
    %61 = arith.extui %60 : vector<16x512xi1> to vector<16x512xi32>
    %62 = arith.sitofp %61 : vector<16x512xi32> to vector<16x512xf32>
    %63 = arith.addf %53, %62 : vector<16x512xf32>
    %64 = vector.extract_strided_slice %0 {offsets = [0, 6], sizes = [16, 1], strides = [1, 1]} : vector<16x12xi32> to vector<16x1xi32>
    %65 = vector.broadcast %64 : vector<16x1xi32> to vector<16x512xi32>
    %66 = arith.cmpi eq, %65, %2 : vector<16x512xi32>
    %c6_i32 = arith.constant 6 : i32
    %67 = vector.broadcast %c6_i32 : i32 to vector<16x1xi32>
    %68 = arith.cmpi sgt, %1, %67 : vector<16x1xi32>
    %69 = vector.broadcast %68 : vector<16x1xi1> to vector<16x512xi1>
    %70 = arith.andi %66, %69 : vector<16x512xi1>
    %71 = arith.extui %70 : vector<16x512xi1> to vector<16x512xi32>
    %72 = arith.sitofp %71 : vector<16x512xi32> to vector<16x512xf32>
    %73 = arith.addf %63, %72 : vector<16x512xf32>
    %74 = vector.extract_strided_slice %0 {offsets = [0, 7], sizes = [16, 1], strides = [1, 1]} : vector<16x12xi32> to vector<16x1xi32>
    %75 = vector.broadcast %74 : vector<16x1xi32> to vector<16x512xi32>
    %76 = arith.cmpi eq, %75, %2 : vector<16x512xi32>
    %c7_i32 = arith.constant 7 : i32
    %77 = vector.broadcast %c7_i32 : i32 to vector<16x1xi32>
    %78 = arith.cmpi sgt, %1, %77 : vector<16x1xi32>
    %79 = vector.broadcast %78 : vector<16x1xi1> to vector<16x512xi1>
    %80 = arith.andi %76, %79 : vector<16x512xi1>
    %81 = arith.extui %80 : vector<16x512xi1> to vector<16x512xi32>
    %82 = arith.sitofp %81 : vector<16x512xi32> to vector<16x512xf32>
    %83 = arith.addf %73, %82 : vector<16x512xf32>
    %84 = vector.extract_strided_slice %0 {offsets = [0, 8], sizes = [16, 1], strides = [1, 1]} : vector<16x12xi32> to vector<16x1xi32>
    %85 = vector.broadcast %84 : vector<16x1xi32> to vector<16x512xi32>
    %86 = arith.cmpi eq, %85, %2 : vector<16x512xi32>
    %c8_i32 = arith.constant 8 : i32
    %87 = vector.broadcast %c8_i32 : i32 to vector<16x1xi32>
    %88 = arith.cmpi sgt, %1, %87 : vector<16x1xi32>
    %89 = vector.broadcast %88 : vector<16x1xi1> to vector<16x512xi1>
    %90 = arith.andi %86, %89 : vector<16x512xi1>
    %91 = arith.extui %90 : vector<16x512xi1> to vector<16x512xi32>
    %92 = arith.sitofp %91 : vector<16x512xi32> to vector<16x512xf32>
    %93 = arith.addf %83, %92 : vector<16x512xf32>
    %94 = vector.extract_strided_slice %0 {offsets = [0, 9], sizes = [16, 1], strides = [1, 1]} : vector<16x12xi32> to vector<16x1xi32>
    %95 = vector.broadcast %94 : vector<16x1xi32> to vector<16x512xi32>
    %96 = arith.cmpi eq, %95, %2 : vector<16x512xi32>
    %c9_i32 = arith.constant 9 : i32
    %97 = vector.broadcast %c9_i32 : i32 to vector<16x1xi32>
    %98 = arith.cmpi sgt, %1, %97 : vector<16x1xi32>
    %99 = vector.broadcast %98 : vector<16x1xi1> to vector<16x512xi1>
    %100 = arith.andi %96, %99 : vector<16x512xi1>
    %101 = arith.extui %100 : vector<16x512xi1> to vector<16x512xi32>
    %102 = arith.sitofp %101 : vector<16x512xi32> to vector<16x512xf32>
    %103 = arith.addf %93, %102 : vector<16x512xf32>
    %104 = vector.extract_strided_slice %0 {offsets = [0, 10], sizes = [16, 1], strides = [1, 1]} : vector<16x12xi32> to vector<16x1xi32>
    %105 = vector.broadcast %104 : vector<16x1xi32> to vector<16x512xi32>
    %106 = arith.cmpi eq, %105, %2 : vector<16x512xi32>
    %c10_i32 = arith.constant 10 : i32
    %107 = vector.broadcast %c10_i32 : i32 to vector<16x1xi32>
    %108 = arith.cmpi sgt, %1, %107 : vector<16x1xi32>
    %109 = vector.broadcast %108 : vector<16x1xi1> to vector<16x512xi1>
    %110 = arith.andi %106, %109 : vector<16x512xi1>
    %111 = arith.extui %110 : vector<16x512xi1> to vector<16x512xi32>
    %112 = arith.sitofp %111 : vector<16x512xi32> to vector<16x512xf32>
    %113 = arith.addf %103, %112 : vector<16x512xf32>
    %114 = vector.extract_strided_slice %0 {offsets = [0, 11], sizes = [16, 1], strides = [1, 1]} : vector<16x12xi32> to vector<16x1xi32>
    %115 = vector.broadcast %114 : vector<16x1xi32> to vector<16x512xi32>
    %116 = arith.cmpi eq, %115, %2 : vector<16x512xi32>
    %c11_i32 = arith.constant 11 : i32
    %117 = vector.broadcast %c11_i32 : i32 to vector<16x1xi32>
    %118 = arith.cmpi sgt, %1, %117 : vector<16x1xi32>
    %119 = vector.broadcast %118 : vector<16x1xi1> to vector<16x512xi1>
    %120 = arith.andi %116, %119 : vector<16x512xi1>
    %121 = arith.extui %120 : vector<16x512xi1> to vector<16x512xi32>
    %122 = arith.sitofp %121 : vector<16x512xi32> to vector<16x512xf32>
    %123 = arith.addf %113, %122 : vector<16x512xf32>
    %124 = arith.truncf %123 : vector<16x512xf32> to vector<16x512xbf16>
    %c0_3 = arith.constant 0 : index
    %c0_4 = arith.constant 0 : index
    %125 = vector.load %arg3[%c0_3, %c0_4] : memref<512x128xbf16, #tpu.memory_space<vmem>>, vector<512x128xbf16>
    %cst_5 = arith.constant dense<0.000000e+00> : vector<16x128xf32>
    %126 = tpu.matmul %124, %125, %cst_5 {dimension_numbers = #tpu.dot_dimension_numbers<[1], [0], [0], [1], [0, 0, 1, 1], [], []>} : vector<16x512xbf16>, vector<512x128xbf16>, vector<16x128xf32> -> vector<16x128xf32>
    %c1_i32_6 = arith.constant 1 : i32
    %127 = vector.broadcast %c1_i32_6 : i32 to vector<16x1xi32>
    %128 = arith.maxsi %1, %127 : vector<16x1xi32>
    %129 = arith.sitofp %128 : vector<16x1xi32> to vector<16x1xf32>
    %cst_7 = arith.constant 1.000000e+00 : f32
    %130 = vector.broadcast %cst_7 : f32 to vector<16x1xf32>
    %131 = arith.divf %130, %129 : vector<16x1xf32>
    %132 = vector.broadcast %131 : vector<16x1xf32> to vector<16x128xf32>
    %133 = arith.mulf %126, %132 : vector<16x128xf32>
    %134 = arith.truncf %133 : vector<16x128xf32> to vector<16x128xbf16>
    %c0_8 = arith.constant 0 : index
    %c0_9 = arith.constant 0 : index
    %135 = vector.load %arg4[%c0_8, %c0_9] : memref<128x128xbf16, #tpu.memory_space<vmem>>, vector<128x128xbf16>
    %cst_10 = arith.constant dense<0.000000e+00> : vector<16x128xf32>
    %136 = tpu.matmul %134, %135, %cst_10 {dimension_numbers = #tpu.dot_dimension_numbers<[1], [0], [0], [1], [0, 0, 1, 1], [], []>} : vector<16x128xbf16>, vector<128x128xbf16>, vector<16x128xf32> -> vector<16x128xf32>
    %c0_11 = arith.constant 0 : index
    %c0_12 = arith.constant 0 : index
    %137 = vector.load %arg5[%c0_11, %c0_12] : memref<1x128xf32, #tpu.memory_space<vmem>>, vector<1x128xf32>
    %138 = vector.broadcast %137 : vector<1x128xf32> to vector<16x128xf32>
    %139 = arith.addf %136, %138 : vector<16x128xf32>
    %cst_13 = arith.constant 0.000000e+00 : f32
    %140 = vector.broadcast %cst_13 : f32 to vector<16x128xf32>
    %141 = arith.maximumf %139, %140 : vector<16x128xf32>
    %142 = arith.truncf %141 : vector<16x128xf32> to vector<16x128xbf16>
    %c0_14 = arith.constant 0 : index
    %c0_15 = arith.constant 0 : index
    %143 = vector.load %arg6[%c0_14, %c0_15] : memref<128x128xbf16, #tpu.memory_space<vmem>>, vector<128x128xbf16>
    %cst_16 = arith.constant dense<0.000000e+00> : vector<16x128xf32>
    %144 = tpu.matmul %142, %143, %cst_16 {dimension_numbers = #tpu.dot_dimension_numbers<[1], [0], [0], [1], [0, 0, 1, 1], [], []>} : vector<16x128xbf16>, vector<128x128xbf16>, vector<16x128xf32> -> vector<16x128xf32>
    %c0_17 = arith.constant 0 : index
    %c0_18 = arith.constant 0 : index
    %145 = vector.load %arg7[%c0_17, %c0_18] : memref<1x128xf32, #tpu.memory_space<vmem>>, vector<1x128xf32>
    %146 = vector.broadcast %145 : vector<1x128xf32> to vector<16x128xf32>
    %147 = arith.addf %144, %146 : vector<16x128xf32>
    %cst_19 = arith.constant 0.000000e+00 : f32
    %148 = vector.broadcast %cst_19 : f32 to vector<16x128xf32>
    %149 = arith.maximumf %147, %148 : vector<16x128xf32>
    %150 = arith.truncf %149 : vector<16x128xf32> to vector<16x128xbf16>
    %c0_20 = arith.constant 0 : index
    %c0_21 = arith.constant 0 : index
    %151 = vector.load %arg8[%c0_20, %c0_21] : memref<128x128xbf16, #tpu.memory_space<vmem>>, vector<128x128xbf16>
    %cst_22 = arith.constant dense<0.000000e+00> : vector<16x128xf32>
    %152 = tpu.matmul %150, %151, %cst_22 {dimension_numbers = #tpu.dot_dimension_numbers<[1], [0], [0], [1], [0, 0, 1, 1], [], []>} : vector<16x128xbf16>, vector<128x128xbf16>, vector<16x128xf32> -> vector<16x128xf32>
    %c0_23 = arith.constant 0 : index
    %c0_24 = arith.constant 0 : index
    %153 = vector.load %arg9[%c0_23, %c0_24] : memref<1x128xf32, #tpu.memory_space<vmem>>, vector<1x128xf32>
    %154 = vector.broadcast %153 : vector<1x128xf32> to vector<16x128xf32>
    %155 = arith.addf %152, %154 : vector<16x128xf32>
    %cst_25 = arith.constant 0.000000e+00 : f32
    %156 = vector.broadcast %cst_25 : f32 to vector<16x128xf32>
    %157 = arith.maximumf %155, %156 : vector<16x128xf32>
    %158 = arith.truncf %157 : vector<16x128xf32> to vector<16x128xbf16>
    %c0_26 = arith.constant 0 : index
    %c0_27 = arith.constant 0 : index
    %159 = vector.load %arg10[%c0_26, %c0_27] : memref<128x128xbf16, #tpu.memory_space<vmem>>, vector<128x128xbf16>
    %cst_28 = arith.constant dense<0.000000e+00> : vector<16x128xf32>
    %160 = tpu.matmul %158, %159, %cst_28 {dimension_numbers = #tpu.dot_dimension_numbers<[1], [0], [0], [1], [0, 0, 1, 1], [], []>} : vector<16x128xbf16>, vector<128x128xbf16>, vector<16x128xf32> -> vector<16x128xf32>
    %c0_29 = arith.constant 0 : index
    %c0_30 = arith.constant 0 : index
    %161 = vector.load %arg11[%c0_29, %c0_30] : memref<1x128xf32, #tpu.memory_space<vmem>>, vector<1x128xf32>
    %162 = vector.broadcast %161 : vector<1x128xf32> to vector<16x128xf32>
    %163 = arith.addf %160, %162 : vector<16x128xf32>
    %cst_31 = arith.constant 0.000000e+00 : f32
    %164 = vector.broadcast %cst_31 : f32 to vector<16x128xf32>
    %165 = arith.maximumf %163, %164 : vector<16x128xf32>
    %c0_32 = arith.constant 0 : index
    %c0_33 = arith.constant 0 : index
    %166 = vector.load %arg12[%c0_32, %c0_33] : memref<16x128xf32, #tpu.memory_space<vmem>>, vector<16x128xf32>
    tpu.vector_store %arg12[%c0_32, %c0_33], %165 {strides = array<i32>} : memref<16x128xf32, #tpu.memory_space<vmem>>, vector<16x128xf32>,
    return
  }
  func.func @transform_0(%arg0: i32) -> (i32, i32) {
    %c0_i32 = arith.constant 0 : i32
    %c0_i32_0 = arith.constant 0 : i32
    return %arg0, %c0_i32 : i32, i32
  }
  func.func @transform_1(%arg0: i32) -> (i32, i32) {
    %c0_i32 = arith.constant 0 : i32
    %c0_i32_0 = arith.constant 0 : i32
    return %arg0, %c0_i32 : i32, i32
  }
  func.func @transform_2(%arg0: i32) -> (i32, i32) {
    %c0_i32 = arith.constant 0 : i32
    %c0_i32_0 = arith.constant 0 : i32
    %c0_i32_1 = arith.constant 0 : i32
    return %c0_i32, %c0_i32_0 : i32, i32
  }
  func.func @transform_3(%arg0: i32) -> (i32, i32) {
    %c0_i32 = arith.constant 0 : i32
    %c0_i32_0 = arith.constant 0 : i32
    %c0_i32_1 = arith.constant 0 : i32
    return %c0_i32, %c0_i32_0 : i32, i32
  }
  func.func @transform_4(%arg0: i32) -> (i32, i32) {
    %c0_i32 = arith.constant 0 : i32
    %c0_i32_0 = arith.constant 0 : i32
    %c0_i32_1 = arith.constant 0 : i32
    return %c0_i32, %c0_i32_0 : i32, i32
  }
  func.func @transform_5(%arg0: i32) -> (i32, i32) {
    %c0_i32 = arith.constant 0 : i32
    %c0_i32_0 = arith.constant 0 : i32
    %c0_i32_1 = arith.constant 0 : i32
    return %c0_i32, %c0_i32_0 : i32, i32
  }
  func.func @transform_6(%arg0: i32) -> (i32, i32) {
    %c0_i32 = arith.constant 0 : i32
    %c0_i32_0 = arith.constant 0 : i32
    %c0_i32_1 = arith.constant 0 : i32
    return %c0_i32, %c0_i32_0 : i32, i32
  }
  func.func @transform_7(%arg0: i32) -> (i32, i32) {
    %c0_i32 = arith.constant 0 : i32
    %c0_i32_0 = arith.constant 0 : i32
    %c0_i32_1 = arith.constant 0 : i32
    return %c0_i32, %c0_i32_0 : i32, i32
  }
  func.func @transform_8(%arg0: i32) -> (i32, i32) {
    %c0_i32 = arith.constant 0 : i32
    %c0_i32_0 = arith.constant 0 : i32
    %c0_i32_1 = arith.constant 0 : i32
    return %c0_i32, %c0_i32_0 : i32, i32
  }
  func.func @transform_9(%arg0: i32) -> (i32, i32) {
    %c0_i32 = arith.constant 0 : i32
    %c0_i32_0 = arith.constant 0 : i32
    %c0_i32_1 = arith.constant 0 : i32
    return %c0_i32, %c0_i32_0 : i32, i32
  }
  func.func @transform_10(%arg0: i32) -> (i32, i32) {
    %c0_i32 = arith.constant 0 : i32
    %c0_i32_0 = arith.constant 0 : i32
    %c0_i32_1 = arith.constant 0 : i32
    return %c0_i32, %c0_i32_0 : i32, i32
  }
  func.func @transform_11(%arg0: i32) -> (i32, i32) {
    %c0_i32 = arith.constant 0 : i32
    %c0_i32_0 = arith.constant 0 : i32
    return %arg0, %c0_i32 : i32, i32
  }
}

</mosaic_0001>

<bundles_post_ra>
// kernel: tpu_custom_call.1
= control target key start
LH: loop header
LB: loop body
LE: loop exit
PB: predicated region body
PF: predicated region fallthrough
CT: control target
= control target key end

     0   :  { %s4454_s0 = inlined_call_operand.vmem [shape: s32[32,12], index: 0, kind: input, shape index: {}]   ;;  %s4455_s1 = inlined_call_operand.vmem [shape: s32[32,1], index: 1, kind: input, shape index: {}]   ;;  %s4456_s2 = inlined_call_operand.hbm [shape: bf16[512,128], index: 2, kind: input, shape index: {}]   ;;  %s4457_s3 = inlined_call_operand.vmem [shape: bf16[128,128], index: 3, kind: input, shape index: {}]   ;;  %s4458_s4 = inlined_call_operand.vmem [shape: f32[1,128], index: 4, kind: input, shape index: {}]   ;;  %s4459_s5 = inlined_call_operand.hbm [shape: bf16[128,128], index: 5, kind: input, shape index: {}]   ;;  %s4460_s6 = inlined_call_operand.vmem [shape: f32[1,128], index: 6, kind: input, shape index: {}]   ;;  %s4461_s7 = inlined_call_operand.hbm [shape: bf16[128,128], index: 7, kind: input, shape index: {}]   ;;  %s4462_s8 = inlined_call_operand.vmem [shape: f32[1,128], index: 8, kind: input, shape index: {}]   ;;  %s4463_s9 = inlined_call_operand.hbm [shape: bf16[128,128], index: 9, kind: input, shape index: {}]   ;;  %s4464_s10 = inlined_call_operand.vmem [shape: f32[1,128], index: 10, kind: input, shape index: {}]   ;;  %s4465_s11 = inlined_call_operand.hbm [shape: f32[32,128], index: 11, kind: output, shape index: {}]  }
   0x1   :  { %4478 = sst [smem:[#allocation21_spill]] %s4465_s11 }
   0x2   :  { %16 = vsyncpa [#allocation3], 0 }
   0x3   :  { %17 = vsyncpa [#allocation6], 0 }
   0x4   :  { %18 = vsyncpa [#allocation9], 0 }
   0x5   :  { %19 = vsyncpa [#allocation4], 0 }
   0x6   :  { %21 = vsyncpa [#allocation4 + $0x1], 0  ;;  %s2943_s17 = smov 0   ;;  %s2945_s18 = smov 0  }
   0x7   :  { %s2947_s19 = smov 0   ;;  %s2949_s20 = smov 0  }
   0x8 LB: > { %4479 = sst [smem:[#allocation15_spill]] %s2846_s17  ;;  %s2964_s21 = sadd.s32 4294967295, %s2858_s20   ;;  %s2858_s20 = sphi %s2949_s20, %s4735_s20   ;;  %s2854_s19 = sphi %s2947_s19, %s4737_s19   ;;  %s2850_s18 = sphi %s2945_s18, %s4739_s18   ;;  %s2846_s17 = sphi %s2943_s17, %s4738_s17  }
   0x9   : > { %4480 = sst [smem:[#allocation16_spill]] %s2854_s19  ;;  %s2130_s22 = sadd.s32 4294967294, %s2858_s20  }
   0xa   : > { %4481 = sst [smem:[#allocation17_spill]] %s2858_s20  ;;  %s2968_s23 = sadd.s32 1, %s2858_s20  }
   0xb   : > { %4482 = sst [smem:[#allocation18_spill]] %s2968_s23  ;;  %s275_s24 = sadd.s32 1, %s2854_s19 }
   0xc   : > { %s272_s25 = ssub.s32 %s2858_s20, %s2968_s23  ;;  %p285_p0 = scmp.ne.s32.totalorder %s2854_s19, %s2850_s18 }
   0xd   : > { %p273_p1 = scmp.eq.s32.totalorder %s272_s25, 0  ;;  %p286_p2 = scmp.eq.s32.totalorder %s2964_s21, 1 }
   0xe   : > { %p291_p3 = scmp.ne.s32.totalorder %s2850_s18, %s2846_s17  ;;  %p292_p4 = scmp.eq.s32.totalorder %s2130_s22, 1 }
   0xf   : > { %s2979_s26 = scalar_select %p273_p1, %s2854_s19, %s275_s24  }
  0x10   : > { %p2981_p5 = por %p286_p2, %p285_p0  ;;  %p2985_p6 = por %p292_p4, %p291_p3 }
  0x11   : > { %4483 = sst [smem:[#allocation19_spill]] %s2979_s26  ;;  %p2131_p7 = scmp.ge.s32.totalorder %s2858_s20, 1 }
  0x12   : > { %s4484_s27 = scalar_select %p2981_p5, 1, 0 }
  0x13   : > { %s4485_s28 = scalar_select %p2985_p6, 1, 0 }
  0x14   : > { %p299_p8 = scmp.lt.s32.totalorder %s2858_s20, 3  ;;  %p4469_p9 = scmp.eq.s32.totalorder %s2964_s21, 0 }
  0x15   : > { %4486 = sst [smem:[#allocation20_spill]] %s4485_s28  ;;  %s2860_s30 = smov [#allocation5]  }
  0x16   : > { %p2992_p10 = pnand %p2131_p7, %p299_p8  ;;  %s330_s12 = sshll.u32 %s2860_s30, 4  ;;  %s2998_s12 = int_to_ptr.vmem [resolvable:$true] %s330_s12 }
  0x17   : > { %s2861_s14 = smov [#allocation2]   ;;  %s2862_s16 = smov [#allocation7]  }
  0x18   : > { %s4487_s29 = scalar_select %p2992_p10, 1, 0 }
  0x19   : > { %p2495_p11 = pneg %p2992_p10  ;;  %s311_s15 = sshll.u32 %s2861_s14, 4  ;;  %s3006_s15 = int_to_ptr.vmem [resolvable:$true] %s311_s15 }
  0x1a   : > { %s3008_s22 = sshll.u32 %s2862_s16, 4  ;;  %s2672_s26 = scalar_lea.hbm %s4459_s5, 1024  ;;  %s347_s22 = int_to_ptr.vmem [resolvable:$true] %s3008_s22 }
  0x1b   : > { %p3002_p12 = pnand %p4469_p9, %p2495_p11  ;;  %p2673_p13 = scmp.ne.s32.totalorder %s4459_s5, %s2672_s26 }
  0x1c   : > { %p2679_p3 = scmp.lt.u32.totalorder %s2672_s26, %s4459_s5 }
  0x1d   : > { %p3018_p0 = pneg %p3002_p12 }
  0x1f   : > { %p2675_p1 = pnand %p3018_p0, %p2673_p13 }
  0x21   : > { %p2676_p2 = pneg %p2675_p1 }
  0x23   : > { %p2681_p4 = pnand %p2679_p3, %p2676_p2 }
  0x25   : > { %2684 = shalt.err (!%p2681_p4)
}
  0x26   : > { %s2685_s19 = scalar_lea.vmem %s2998_s12, 1024  ;;  %p2693_p9 = scmp.lt.s32.totalorder %s2998_s12, %s2998_s12 }
  0x27   : > { %p2686_p7 = scmp.ne.s32.totalorder %s2998_s12, %s2685_s19  ;;  %p2694_p6 = scmp.lt.s32.totalorder %s2685_s19, %s2685_s19 }
  0x29   : > { %p2688_p8 = pnand %p2686_p7, %p3018_p0  ;;  %p2695_p13 = por %p2694_p6, %p2693_p9 }
  0x2b   : > { %p2689_p11 = pneg %p2688_p8 }
  0x2d   : > { %p2696_p1 = pnand %p2695_p13, %p2689_p11 }
  0x2f   : > { %2699 = shalt.err (!%p2696_p1)
}
  0x30   : > { %s2863_s24 = smov 64   ;;  %s2864_s26 = smov 4  }
  0x31   : > { %2501 = dma.hbm_to_vmem [thread:$0]  (!%p3002_p12), %s4459_s5, 1024, %s2998_s12, [#allocation6], %s2863_s24, %s2863_s24, %s2864_s26  }
  0x32   : > { %s2700_s19 = scalar_lea.hbm %s4456_s2, 4096 }
  0x33   : > { %p2701_p6 = scmp.ne.s32.totalorder %s4456_s2, %s2700_s19  ;;  %p2707_p3 = scmp.lt.u32.totalorder %s2700_s19, %s4456_s2 }
  0x35   : > { %p2703_p9 = pnand %p2701_p6, %p3018_p0 }
  0x37   : > { %p2704_p2 = pneg %p2703_p9 }
  0x39   : > { %p2709_p4 = pnand %p2707_p3, %p2704_p2 }
  0x3b   : > { %2712 = shalt.err (!%p2709_p4)
}
  0x3c   : > { %s2713_s12 = scalar_lea.vmem %s3006_s15, 4096  ;;  %p2721_p13 = scmp.lt.s32.totalorder %s3006_s15, %s3006_s15 }
  0x3d   : > { %p2714_p7 = scmp.ne.s32.totalorder %s3006_s15, %s2713_s12  ;;  %p2722_p1 = scmp.lt.s32.totalorder %s2713_s12, %s2713_s12 }
  0x3f   : > { %p2716_p8 = pnand %p2714_p7, %p3018_p0  ;;  %p2723_p6 = por %p2722_p1, %p2721_p13 }
  0x41   : > { %p2717_p11 = pneg %p2716_p8 }
  0x43   : > { %p2724_p9 = pnand %p2723_p6, %p2717_p11 }
  0x45   : > { %2727 = shalt.err (!%p2724_p9)
}
  0x46   : > { %2498 = dma.hbm_to_vmem [thread:$0]  (!%p3002_p12), %s4456_s2, 4096, %s3006_s15, [#allocation3], %s2863_s24, %s2863_s24, %s2864_s26  }
  0x47   : > { %s2728_s25 = scalar_lea.hbm %s4461_s7, 1024 }
  0x48   : > { %p2729_p2 = scmp.ne.s32.totalorder %s4461_s7, %s2728_s25  ;;  %p2735_p7 = scmp.lt.u32.totalorder %s2728_s25, %s4461_s7 }
  0x4a   : > { %p2731_p3 = pnand %p2729_p2, %p3018_p0 }
  0x4c   : > { %p2732_p4 = pneg %p2731_p3 }
  0x4e   : > { %p2737_p8 = pnand %p2735_p7, %p2732_p4 }
  0x50   : > { %2740 = shalt.err (!%p2737_p8)
}
  0x51   : > { %s2741_s12 = scalar_lea.vmem %s347_s22, 1024  ;;  %p2749_p6 = scmp.lt.s32.totalorder %s347_s22, %s347_s22 }
  0x52   : > { %p2742_p11 = scmp.ne.s32.totalorder %s347_s22, %s2741_s12  ;;  %p2750_p9 = scmp.lt.s32.totalorder %s2741_s12, %s2741_s12 }
  0x54   : > { %p2744_p13 = pnand %p2742_p11, %p3018_p0  ;;  %p2751_p5 = por %p2750_p9, %p2749_p6 }
  0x56   : > { %p2745_p1 = pneg %p2744_p13 }
  0x58   : > { %p2752_p10 = pnand %p2751_p5, %p2745_p1 }
  0x5a   : > { %2755 = shalt.err (!%p2752_p10)
}
  0x5b   : > { %2504 = dma.hbm_to_vmem [thread:$0]  (!%p3002_p12), %s4461_s7, 1024, %s347_s22, [#allocation6], %s2863_s24, %s2863_s24, %s2864_s26  }
  0x5c   : > { %s2865_s17 = smov [#allocation8]   ;;  %s2756_s30 = scalar_lea.hbm %s4463_s9, 1024 }
  0x5d   : > { %s362_s20 = sshll.u32 %s2865_s17, 4  ;;  %p2757_p5 = scmp.ne.s32.totalorder %s4463_s9, %s2756_s30  ;;  %s363_s20 = int_to_ptr.vmem [resolvable:$true] %s362_s20 }
  0x5e   : > { %p2763_p3 = scmp.lt.u32.totalorder %s2756_s30, %s4463_s9 }
  0x5f   : > { %p2759_p10 = pnand %p2757_p5, %p3018_p0 }
  0x61   : > { %p2760_p2 = pneg %p2759_p10 }
  0x63   : > { %p2765_p4 = pnand %p2763_p3, %p2760_p2 }
  0x65   : > { %2768 = shalt.err (!%p2765_p4)
}
  0x66   : > { %s2769_s22 = scalar_lea.vmem %s363_s20, 1024  ;;  %p2777_p13 = scmp.lt.s32.totalorder %s363_s20, %s363_s20 }
  0x67   : > { %p2770_p7 = scmp.ne.s32.totalorder %s363_s20, %s2769_s22  ;;  %p2778_p1 = scmp.lt.s32.totalorder %s2769_s22, %s2769_s22 }
  0x69   : > { %p2772_p8 = pnand %p2770_p7, %p3018_p0  ;;  %p2779_p6 = por %p2778_p1, %p2777_p13 }
  0x6b   : > { %p2773_p11 = pneg %p2772_p8 }
  0x6d   : > { %p2780_p9 = pnand %p2779_p6, %p2773_p11 }
  0x6f   : > { %2783 = shalt.err (!%p2780_p9)
}
  0x70   : > { %2507 = dma.hbm_to_vmem [thread:$0]  (!%p3002_p12), %s4463_s9, 1024, %s363_s20, [#allocation9], %s2863_s24, %s2863_s24, %s2864_s26  }
  0x71   : > { %p4490_p5 = scmp.ne.s32.totalorder %s4487_s29, 0 }
  0x72   : > { %p4491_p0 = scmp.eq.s32.totalorder (!%p4490_p5), %s2964_s21, 0 }
  0x73   : > { %399 = sbr.rel (%p4490_p5) target bundleno = 1525 (0x5f5), region = 64 }
  0x7a   : > { %2829 = dma.done.wait (%p4491_p0), [#allocation3], 4096   ;;  %p4492_p10 = pmov %p4491_p0 }
  0x7b   : > { %p4493_p2 = pmov %p4491_p0 }
  0x7c   : > { %2831 = vsyncadd (%p4492_p10), [#allocation3], 4294963200 }
  0x7d   : > { %2833 = dma.done.wait (%p4493_p2), [#allocation6], 2048   ;;  %p4494_p3 = pmov %p4491_p0 }
  0x7e   : > { %p4495_p4 = pmov %p4491_p0 }
  0x7f   : > { %2835 = vsyncadd (%p4494_p3), [#allocation6], 4294965248 }
  0x80   : > { %2837 = dma.done.wait (%p4495_p4), [#allocation9], 1024   ;;  %p4496_p12 = pmov %p4491_p0 }
  0x81   : > { %s2143_s23 = sshll.u32 %s2964_s21, 1  ;;  %v2866_v0 = vmov 1   ;;  %v2867_v6 = vmov 0   ;;  %v2868_v9 = vmov 3   ;;  %v2869_v11 = vmov 5   ;;  %v2604_v40 = vld [vmem:[#allocation2 + $0x40] sm:$0xff]  }
  0x82   : > { %2839 = vsyncadd (%p4496_p12), [#allocation9], 4294966272  ;;  %2576 = vset.pattern.permute.xlu1 %v2866_v0  ;;  %2575 = vset.pattern.permute.xlu0 %v2866_v0  ;;  %p457_p7 = scmp.lt.s32.totalorder %s2143_s23, 3  ;;  %v2870_v20 = vmov 7   ;;  %v2871_v21 = vmov 2   ;;  %v2872_v22 = vmov 9  }
  0x83   : > { %v2873_v23 = vmov 11   ;;  %v2874_v24 = vmov 4   ;;  %v2875_v30 = vmov 6   ;;  %v2876_v36 = vmov 8   ;;  %v2605_v41 = vld [vmem:[#allocation2 + $0xc0] sm:$0xff]   ;;  %v2608_v44 = vld [vmem:[#allocation2 + $0x48] sm:$0xff]   ;;  %2317 = vmatprep.subr.bf16.mxu0 %v2604_v40 }
  0x84   : > { %s4741_s23 = smov (!%p457_p7, %s2143_s23), 3  ;;  %v2877_v39 = vmov 10   ;;  %v2606_v42 = vld [vmem:[#allocation2] sm:$0xff]   ;;  %v2609_v45 = vld [vmem:[#allocation2 + $0xc8] sm:$0xff]   ;;  %2339 = vmatprep.subr.bf16.mxu1 %v2605_v41  ;;  %v2612_v48 = vld [vmem:[#allocation2 + $0x50] sm:$0xff]   ;;  %s453_s12 = sand.u32 1, %s2850_s18  }
  0x85   : > { %s2144_s29 = sshll.u32 %s4741_s23, 3  ;;  %v2607_v43 = vld [vmem:[#allocation2 + $0x80] sm:$0xff]   ;;  %2318 = vmatpush3.bf16.msra.mxu0 %v2606_v42  ;;  %v2610_v46 = vld [vmem:[#allocation2 + $0x8] sm:$0xff]   ;;  %v2613_v49 = vld [vmem:[#allocation2 + $0xd0] sm:$0xff]   ;;  %s2142_s22 = sshll.u32 %s453_s12, 4 }
  0x86   : > { %s460_s26 = scalar_lea.vmem %s4454_s0, %s2144_s29  ;;  %s466_s28 = scalar_lea.vmem %s4455_s1, %s2144_s29  ;;  %2340 = vmatpush3.bf16.msra.mxu1 %v2607_v43  ;;  %v2611_v47 = vld [vmem:[#allocation2 + $0x88] sm:$0xff]   ;;  %2319 = vmatprep.subr.bf16.mxu0 %v2608_v44  ;;  %v2614_v52 = vld [vmem:[#allocation2 + $0x10] sm:$0xff]   ;;  %v2616_v54 = vld [vmem:[#allocation2 + $0x58] sm:$0xff]  }
  0x87   : > { %v3132_v1 = vld [vmem:[%s460_s26 + $0x8] sm:$0xff]  ;;  %v3134_v2 = vld [vmem:[%s466_s28] sm:$0xff]  ;;  %2341 = vmatprep.subr.bf16.mxu1 %v2609_v45  ;;  %v2615_v53 = vld [vmem:[#allocation2 + $0x90] sm:$0xff]   ;;  %s455_s23 = scalar_lea.vmem [#allocation10], %s2142_s22  ;;  %s2316_s13 = sshll.u32 %s2964_s21, 8 }
  0x88   : > { %v3136_v3 = vld [vmem:[%s466_s28 + $0x8] sm:$0xff]  ;;  %541 = vperm.xlu1 %2576, %v3132_v1   ;;  %v3139_v4 = vld [vmem:[%s460_s26] sm:$0xff]  ;;  %vm493_vm0 = vcmp.gt.s32.totalorder %v3134_v2, 0  ;;  %vm551_vm1 = vcmp.gt.s32.totalorder %v3134_v2, 1  ;;  %vm667_vm5 = vcmp.gt.s32.totalorder %v3134_v2, 3  ;;  %vm609_vm6 = vcmp.gt.s32.totalorder %v3134_v2, 2 }
  0x89   : > { %538 = vperm.xlu0 %2575, %v3139_v4   ;;  %v3147_v5 = vsel %vm551_vm1, %v3134_v2, 1  ;;  %v495_v7 = vsel %vm493_vm0, 1, %v2867_v6  ;;  %vm552_vm2 = vcmp.gt.s32.totalorder %v3136_v3, 1  ;;  %vm494_vm3 = vcmp.gt.s32.totalorder %v3136_v3, 0  ;;  %2320 = vmatpush3.bf16.msra.mxu0 %v2610_v46  ;;  %v2617_v55 = vld [vmem:[#allocation2 + $0xd8] sm:$0xff]   ;;  %v2620_v61 = vld [vmem:[#allocation2 + $0x60] sm:$0xff]  }
  0x8a   : > { %v3155_v8 = vsel %vm552_vm2, %v3136_v3, 1  ;;  %v496_v10 = vsel %vm494_vm3, 1, %v2867_v6  ;;  %vm610_vm4 = vcmp.gt.s32.totalorder %v3136_v3, 2  ;;  %v553_v12 = vsel %vm551_vm1, 1, %v2867_v6  ;;  %2342 = vmatpush3.bf16.msra.mxu1 %v2611_v47  ;;  %2321 = vmatprep.subr.bf16.mxu0 %v2612_v48  ;;  %v2618_v57 = vld [vmem:[#allocation2 + $0x18] sm:$0xff]   ;;  %v2621_v62 = vld [vmem:[#allocation2 + $0xe0] sm:$0xff]  }
  0x8b   : > { %vm668_vm7 = vcmp.gt.s32.totalorder %v3136_v3, 3  ;;  %vm725_vm8 = vcmp.gt.s32.totalorder %v3134_v2, 4  ;;  %vm726_vm9 = vcmp.gt.s32.totalorder %v3136_v3, 4  ;;  %v612_v13 = vsel %vm610_vm4, 1, %v2867_v6  ;;  %2343 = vmatprep.subr.bf16.mxu1 %v2613_v49  ;;  %v2619_v58 = vld [vmem:[#allocation2 + $0x98] sm:$0xff]   ;;  %v2622_v63 = vld [vmem:[#allocation2 + $0x20] sm:$0xff]  }
  0x8c   : > { %2577 = vset.pattern.permute.xlu1 %v2867_v6  ;;  %v669_v14 = vsel %vm667_vm5, 1, %v2867_v6  ;;  %v554_v15 = vsel %vm552_vm2, 1, %v2867_v6  ;;  %v611_v16 = vsel %vm609_vm6, 1, %v2867_v6  ;;  %v670_v17 = vsel %vm668_vm7, 1, %v2867_v6  ;;  %s2015_s29 = sshll.u32 %s455_s23, 4  ;;  %s4728_s17 = sld [smem:[#allocation21_spill]]  ;;  %s4406_s29 = int_to_ptr.vmem [resolvable:$true] %s2015_s29 }
  0x8d   : > { %2580 = vset.pattern.permute.xlu0 %v2868_v9  ;;  %498 = vperm.xlu1 %2577, %v495_v7   ;;  %v727_v18 = vsel %vm725_vm8, 1, %v2867_v6  ;;  %v728_v19 = vsel %vm726_vm9, 1, %v2867_v6  ;;  %vm784_vm10 = vcmp.gt.s32.totalorder %v3136_v3, 5  ;;  %vm841_vm11 = vcmp.gt.s32.totalorder %v3134_v2, 6  ;;  %s4413_s25 = scalar_lea.sflag [#allocation4], %s453_s12  ;;  %s2784_s30 = scalar_lea.vmem %s4406_s29, 256 }
  0x8e   : > { %654 = vperm.xlu0 %2580, %v3139_v4   ;;  %v786_v25 = vsel %vm784_vm10, 1, %v2867_v6  ;;  %vm783_vm12 = vcmp.gt.s32.totalorder %v3134_v2, 5  ;;  %v843_v26 = vsel %vm841_vm11, 1, %v2867_v6  ;;  %vm900_vm13 = vcmp.gt.s32.totalorder %v3136_v3, 7  ;;  %2322 = vmatpush3.bf16.msra.mxu0 %v2614_v52  ;;  %p2785_p8 = scmp.ne.s32.totalorder %s4406_s29, %s2784_s30  ;;  %p4730_p11 = scmp.ne.s32.totalorder %s4484_s27, 0 }
  0x8f   : > { %v785_v27 = vsel %vm783_vm12, 1, %v2867_v6  ;;  %v902_v28 = vsel %vm900_vm13, 1, %v2867_v6  ;;  %vm957_vm14 = vcmp.gt.s32.totalorder %v3134_v2, 8  ;;  %vm1016_vm15 = vcmp.gt.s32.totalorder %v3136_v3, 9  ;;  %2344 = vmatpush3.bf16.msra.mxu1 %v2615_v53  ;;  %2323 = vmatprep.subr.bf16.mxu0 %v2616_v54  ;;  %s2880_s21 = smov [#allocation10]  }
  0x90   : > { %v959_v29 = vsel %vm957_vm14, 1, %v2867_v6  ;;  %v1018_v31 = vsel %vm1016_vm15, 1, %v2867_v6  ;;  %vm842_vm0 = vcmp.gt.s32.totalorder %v3136_v3, 6  ;;  %vm1073_vm1 = vcmp.gt.s32.totalorder %v3134_v2, 10  ;;  %2345 = vmatprep.subr.bf16.mxu1 %v2617_v55  ;;  %p2786_p13 = pnand %p2785_p8, %p4730_p11  ;;  %s2788_s14 = sshll.u32 %s2880_s21, 4  ;;  %s2789_s14 = int_to_ptr.vmem [resolvable:$false] %s2788_s14 }
  0x91   : > { %501 = vperm.xlu1 %2577, %v496_v10   ;;  %v844_v32 = vsel %vm842_vm0, 1, %v2867_v6  ;;  %v1075_v33 = vsel %vm1073_vm1, 1, %v2867_v6  ;;  %vm1132_vm2 = vcmp.gt.s32.totalorder %v3136_v3, 11  ;;  %vm899_vm3 = vcmp.gt.s32.totalorder %v3134_v2, 7  ;;  %s2790_s16 = scalar_lea.vmem %s2789_s14, 512  ;;  %p2791_p6 = scmp.lt.s32.totalorder %s4406_s29, %s2789_s14 }
  0x92   : > { %2585 = vset.pattern.permute.xlu0 %v2869_v11  ;;  %v1134_v34 = vsel %vm1132_vm2, 1, %v2867_v6  ;;  %v901_v35 = vsel %vm899_vm3, 1, %v2867_v6  ;;  %vm958_vm4 = vcmp.gt.s32.totalorder %v3136_v3, 8  ;;  %vm1015_vm5 = vcmp.gt.s32.totalorder %v3134_v2, 9  ;;  %2324 = vmatpush3.bf16.msra.mxu0 %v2618_v57  ;;  %s4729_s28 = smov %s4728_s17  ;;  %s4411_s20 = scalar_lea.hbm %s4728_s17, %s2316_s13 }
  0x93   : > { %770 = vperm.xlu0 %2585, %v3139_v4   ;;  %v960_v37 = vsel %vm958_vm4, 1, %v2867_v6  ;;  %v1017_v38 = vsel %vm1015_vm5, 1, %v2867_v6  ;;  %vm1074_vm6 = vcmp.gt.s32.totalorder %v3136_v3, 10  ;;  %v1521_v50 = vcvt.s32.f32 %v3147_v5  ;;  %2346 = vmatpush3.bf16.msra.mxu1 %v2619_v58  ;;  %v2623_v3 = vld [vmem:[#allocation2 + $0xa0] sm:$0xff]   ;;  %v2625_v5 = vld [vmem:[#allocation2 + $0xe8] sm:$0xff]   ;;  %p2787_p1 = pneg %p2786_p13  ;;  %p2792_p9 = scmp.lt.s32.totalorder %s2790_s16, %s2784_s30 }
  0x94   : > { %v1076_v51 = vsel %vm1074_vm6, 1, %v2867_v6  ;;  %v1522_v56 = vcvt.s32.f32 %v3155_v8  ;;  %vm1131_vm7 = vcmp.gt.s32.totalorder %v3134_v2, 11  ;;  %2325 = vmatprep.subr.bf16.mxu0 %v2620_v61  ;;  %2347 = vmatprep.subr.bf16.mxu1 %v2621_v62  ;;  %v2626_v2 = vld [vmem:[#allocation2 + $0x28] sm:$0xff]   ;;  %v4519_v62 = vmov 0 }
  0x95   : > { %556 = vperm.xlu1 %2577, %v553_v12   ;;  %2668 = vrcp.f32 %v1521_v50  ;;  %v1133_v0 = vsel %vm1131_vm7, 1, %v2867_v6  ;;  %v2629_v12 = vld [vmem:[#allocation2 + $0xf0] sm:$0xff]   ;;  %p2793_p5 = por %p2792_p9, %p2791_p6 }
  0x96   : > { %2670 = vrcp.f32 %v1522_v56  ;;  %2326 = vmatpush3.bf16.msra.mxu0 %v2622_v63 }
  0x97   : > { %2590 = vset.pattern.permute.xlu0 %v2870_v20  ;;  %2348 = vmatpush3.bf16.msra.mxu1 %v2623_v3  ;;  %p2794_p0 = pnand %p2793_p5, %p2787_p1 }
  0x98   : > { %886 = vperm.xlu0 %2590, %v3139_v4   ;;  %2349 = vmatprep.subr.bf16.mxu1 %v2625_v5 }
  0x99   : > { %2578 = vset.pattern.permute.xlu1 %v2871_v21  ;;  %v2635_v21 = vld [vmem:[#allocation2 + $0xb8] sm:$0xff]  }
  0x9a   : > { %596 = vperm.xlu1 %2578, %v3139_v4  }
  0x9c   : > { %2595 = vset.pattern.permute.xlu0 %v2872_v22 }
  0x9d   : > { %1002 = vperm.xlu0 %2595, %v3139_v4  }
  0x9e   : > { %599 = vperm.xlu1 %2578, %v3132_v1  }
  0x9f   : > { %v2669_v8 = vpop.eup %2668 }
  0xa1   : > { %2600 = vset.pattern.permute.xlu0 %v2873_v23 }
  0xa2   : > { %1118 = vperm.xlu0 %2600, %v3139_v4   ;;  %2579 = vset.pattern.permute.xlu1 %v2867_v6 }
  0xa3   : > { %617 = vperm.xlu1 %2579, %v612_v13   ;;  %v2630_v13 = vld [vmem:[#allocation2 + $0x30] sm:$0xff]  }
  0xa6   : > { %2601 = vset.pattern.permute.xlu0 %v2867_v6 }
  0xa7   : > { %480 = vperm.xlu0 %2601, %v3139_v4   ;;  %2581 = vset.pattern.permute.xlu1 %v2868_v9  ;;  %v2627_v9 = vld [vmem:[#allocation2 + $0xa8] sm:$0xff]  }
  0xa8   : > { %657 = vperm.xlu1 %2581, %v3132_v1   ;;  %2350 = vmatpush3.bf16.msra.mxu1 %v2627_v9 }
  0xa9   : > { %2351 = vmatprep.subr.bf16.mxu1 %v2629_v12 }
  0xab   : > { %483 = vperm.xlu0 %2601, %v3132_v1  }
  0xac   : > { %2582 = vset.pattern.permute.xlu1 %v2867_v6 }
  0xad   : > { %672 = vperm.xlu1 %2582, %v669_v14   ;;  %v2671_v14 = vpop.eup %2670 }
  0xaf   : > { %559 = vperm.xlu0 %2601, %v554_v15  }
  0xb1   : > { %2583 = vset.pattern.permute.xlu1 %v2874_v24 }
  0xb2   : > { %712 = vperm.xlu1 %2583, %v3139_v4  }
  0xb3   : > { %614 = vperm.xlu0 %2601, %v611_v16   ;;  %v2632_v16 = vld [vmem:[#allocation2 + $0x78] sm:$0xff]  }
  0xb6   : > { %715 = vperm.xlu1 %2583, %v3132_v1  }
  0xb7   : > { %675 = vperm.xlu0 %2601, %v670_v17   ;;  %v2633_v17 = vld [vmem:[#allocation2 + $0xf8] sm:$0xff]  }
  0xba   : > { %2584 = vset.pattern.permute.xlu1 %v2867_v6 }
  0xbb   : > { %730 = vperm.xlu0 %2601, %v727_v18   ;;  %733 = vperm.xlu1 %2584, %v728_v19   ;;  %v474_v18 = vlaneseq }
  0xbf   : > { %2586 = vset.pattern.permute.xlu1 %v2869_v11  ;;  %791 = vperm.xlu0 %2601, %v786_v25   ;;  %v2628_v11 = vld [vmem:[#allocation2 + $0x70] sm:$0xff]   ;;  %v2878_v25 = vmov 0.0  }
  0xc0   : > { %773 = vperm.xlu1 %2586, %v3132_v1  }
  0xc3   : > { %846 = vperm.xlu0 %2601, %v843_v26  }
  0xc4   : > { %2587 = vset.pattern.permute.xlu1 %v2867_v6 }
  0xc5   : > { %788 = vperm.xlu1 %2587, %v785_v27  }
  0xc7   : > { %907 = vperm.xlu0 %2601, %v902_v28  }
  0xc9   : > { %2588 = vset.pattern.permute.xlu1 %v2875_v30 }
  0xca   : > { %828 = vperm.xlu1 %2588, %v3139_v4  }
  0xcb   : > { %962 = vperm.xlu0 %2601, %v959_v29  }
  0xce   : > { %831 = vperm.xlu1 %2588, %v3132_v1  }
  0xcf   : > { %1023 = vperm.xlu0 %2601, %v1018_v31  }
  0xd2   : > { %2589 = vset.pattern.permute.xlu1 %v2867_v6 }
  0xd3   : > { %849 = vperm.xlu1 %2589, %v844_v32   ;;  %1078 = vperm.xlu0 %2601, %v1075_v33  }
  0xd7   : > { %2591 = vset.pattern.permute.xlu1 %v2870_v20  ;;  %1139 = vperm.xlu0 %2601, %v1134_v34   ;;  %v2634_v20 = vld [vmem:[#allocation2 + $0x38] sm:$0xff]  }
  0xd8   : > { %889 = vperm.xlu1 %2591, %v3132_v1  }
  0xdc   : > { %2592 = vset.pattern.permute.xlu1 %v2867_v6 }
  0xdd   : > { %904 = vperm.xlu1 %2592, %v901_v35  }
  0xe1   : > { %2593 = vset.pattern.permute.xlu1 %v2876_v36 }
  0xe2   : > { %944 = vperm.xlu1 %2593, %v3139_v4  }
  0xe6   : > { %947 = vperm.xlu1 %2593, %v3132_v1  }
  0xea   : > { %2594 = vset.pattern.permute.xlu1 %v2867_v6 }
  0xeb   : > { %965 = vperm.xlu1 %2594, %v960_v37  }
  0xef   : > { %2596 = vset.pattern.permute.xlu1 %v2872_v22 }
  0xf0   : > { %1005 = vperm.xlu1 %2596, %v3132_v1  }
  0xf4   : > { %2597 = vset.pattern.permute.xlu1 %v2867_v6 }
  0xf5   : > { %1020 = vperm.xlu1 %2597, %v1017_v38  }
  0xf9   : > { %2598 = vset.pattern.permute.xlu1 %v2877_v39  ;;  %v4509_v39 = vmov 0 }
  0xfa   : > { %1060 = vperm.xlu1 %2598, %v3139_v4   ;;  %v2624_v4 = vld [vmem:[#allocation2 + $0x68] sm:$0xff]  }
  0xfb   : > { %2327 = vmatprep.subr.bf16.mxu0 %v2624_v4  ;;  %v4525_v4 = vmov 0 }
  0xfc   : > { %2328 = vmatpush3.bf16.msra.mxu0 %v2626_v2 }
  0xfd   : > { %2329 = vmatprep.subr.bf16.mxu0 %v2628_v11 }
  0xfe   : > { %1063 = vperm.xlu1 %2598, %v3132_v1  }
 0x100   : > { %2330 = vmatpush3.bf16.msra.mxu0 %v2630_v13 }
 0x101   : > { %2331 = vmatprep.subr.bf16.mxu0 %v2632_v16 }
 0x102   : > { %2599 = vset.pattern.permute.xlu1 %v2867_v6 }
 0x103   : > { %1081 = vperm.xlu1 %2599, %v1076_v51  }
 0x104   : > { %2332 = vmatpush3.bf16.msra.mxu0 %v2634_v20 }
 0x105   : > { %2397 = vmatprep.subr.bf16.mxu0 %v2878_v25 }
 0x107   : > { %v3241_v59 = vpop.permute.xlu1 %541  ;;  %2602 = vset.pattern.permute.xlu1 %v2873_v23  ;;  %v3260_v23 = vand.u32 127, %v474_v18 }
 0x108   : > { %1121 = vperm.xlu1 %2602, %v3132_v1   ;;  %v3246_v60 = vpop.permute.xlu0 %538 }
 0x109   : > { %v3267_v26 = vadd.s32 128, %v3260_v23  ;;  %v3272_v28 = vadd.s32 256, %v3260_v23  ;;  %vm543_vm8 = vcmp.eq.s32.totalorder %v3246_v60, %v3260_v23  ;;  %v3277_v30 = vadd.s32 384, %v3260_v23 }
 0x10b   : > { %vm544_vm10 = vcmp.eq.s32.totalorder %v3246_v60, %v3267_v26  ;;  %vm545_vm11 = vcmp.eq.s32.totalorder %v3246_v60, %v3272_v28  ;;  %vm546_vm12 = vcmp.eq.s32.totalorder %v3246_v60, %v3277_v30 }
 0x10c   : > { %v3249_v7 = vpop.permute.xlu1 %498  ;;  %2603 = vset.pattern.permute.xlu1 %v2867_v6  ;;  %v2631_v6 = vld [vmem:[#allocation2 + $0xb0] sm:$0xff]  }
 0x10d   : > { %1136 = vperm.xlu1 %2603, %v1133_v0   ;;  %v3252_v1 = vpop.permute.xlu0 %654  ;;  %2352 = vmatpush3.bf16.msra.mxu1 %v2631_v6  ;;  %v4523_v0 = vmov 0 }
 0x10e   : > { %2353 = vmatprep.subr.bf16.mxu1 %v2633_v17 }
 0x110   : > { %v3254_v10 = vpop.permute.xlu1 %501 }
 0x111   : > { %1529 = vperm.xlu1 %2603, %v2669_v8   ;;  %2354 = vmatpush3.bf16.msra.mxu1 %v2635_v21 }
 0x112   : > { %v3256_v15 = vpop.permute.xlu0 %770  ;;  %2417 = vmatprep.subr.bf16.mxu1 %v2878_v25 }
 0x114   : > { %v557_v19 = vpop.permute.xlu1 %556 }
 0x115   : > { %1534 = vperm.xlu1 %2603, %v2671_v14   ;;  %vm561_vm9 = vcmp.eq.s32.totalorder %v557_v19, 1 }
 0x116   : > { %vm3285_vm13 = vmand %vm543_vm8, %vm561_vm9 }
 0x117   : > { %v3258_v22 = vpop.permute.xlu0 %886  ;;  %vm3289_vm14 = vmand %vm544_vm10, %vm561_vm9  ;;  %v2155_v43 = vsel %vm3285_vm13, 1.0, %v2878_v25 }
 0x118   : > { %vm3295_vm15 = vmand %vm545_vm11, %vm561_vm9  ;;  %v2156_v44 = vsel %vm3289_vm14, 1.0, %v2878_v25 }
 0x119   : > { %v3262_v24 = vpop.permute.xlu1 %596  ;;  %vm3299_vm0 = vmand %vm546_vm12, %vm561_vm9  ;;  %vm503_vm9 = vcmp.eq.s32.totalorder %v3249_v7, 1  ;;  %v2157_v46 = vsel %vm3295_vm15, 1.0, %v2878_v25 }
 0x11a   : > { %v2158_v47 = vsel %vm3299_vm0, 1.0, %v2878_v25 }
 0x11c   : > { %v3269_v27 = vpop.permute.xlu0 %1002 }
 0x11d   : > { %v600_v29 = vpop.permute.xlu1 %599 }
 0x11e   : > { %vm605_vm1 = vcmp.eq.s32.totalorder %v600_v29, %v3260_v23  ;;  %vm606_vm3 = vcmp.eq.s32.totalorder %v600_v29, %v3267_v26  ;;  %vm607_vm5 = vcmp.eq.s32.totalorder %v600_v29, %v3272_v28  ;;  %vm608_vm7 = vcmp.eq.s32.totalorder %v600_v29, %v3277_v30 }
 0x121   : > { %v3293_v33 = vpop.permute.xlu0 %1118 }
 0x122   : > { %v618_v35 = vpop.permute.xlu1 %617 }
 0x123   : > { %vm620_vm2 = vcmp.eq.s32.totalorder %v618_v35, 1 }
 0x124   : > { %vm3305_vm4 = vmand %vm605_vm1, %vm620_vm2 }
 0x125   : > { %vm3310_vm6 = vmand %vm606_vm3, %vm620_vm2 }
 0x126   : > { %vm3315_vm8 = vmand %vm607_vm5, %vm620_vm2  ;;  %v481_v40 = vpop.permute.xlu0 %480  ;;  %v2168_v2 = vsel %vm3310_vm6, 1.0, %v2878_v25 }
 0x127   : > { %v4510_v39 = vsel %vm3315_vm8, 4294967295, %v4509_v39  ;;  %vm3320_vm10 = vmand %vm608_vm7, %vm620_vm2  ;;  %vm485_vm11 = vcmp.eq.s32.totalorder %v481_v40, %v3260_v23  ;;  %vm486_vm12 = vcmp.eq.s32.totalorder %v481_v40, %v3267_v26  ;;  %vm487_vm1 = vcmp.eq.s32.totalorder %v481_v40, %v3272_v28  ;;  %v3327_v42 = vpop.permute.xlu1 %657 }
 0x128   : > { %vm488_vm3 = vcmp.eq.s32.totalorder %v481_v40, %v3277_v30  ;;  %vm505_vm5 = vmand %vm485_vm11, %vm503_vm9  ;;  %vm504_vm8 = vcmp.eq.s32.totalorder %v3254_v10, 1  ;;  %v2170_v9 = vsel %vm3320_vm10, 1.0, %v2878_v25 }
 0x129   : > { %vm506_vm2 = vmand %vm486_vm12, %vm503_vm9  ;;  %v2147_v45 = vsel %vm505_vm5, 1.0, %v2878_v25 }
 0x12a   : > { %vm507_vm13 = vmand %vm487_vm1, %vm503_vm9  ;;  %v2148_v48 = vsel %vm506_vm2, 1.0, %v2878_v25  ;;  %v484_v49 = vpop.permute.xlu0 %483  ;;  %v3351_v50 = vadd.f32 %v2155_v43, %v2147_v45  ;;  %vm659_vm1 = vcmp.eq.s32.totalorder %v3252_v1, %v3260_v23  ;;  %vm660_vm2 = vcmp.eq.s32.totalorder %v3252_v1, %v3267_v26 }
 0x12b   : > { %vm508_vm14 = vmand %vm488_vm3, %vm503_vm9  ;;  %v2149_v51 = vsel %vm507_vm13, 1.0, %v2878_v25  ;;  %vm489_vm7 = vcmp.eq.s32.totalorder %v484_v49, %v3260_v23  ;;  %vm490_vm15 = vcmp.eq.s32.totalorder %v484_v49, %v3267_v26  ;;  %vm491_vm11 = vcmp.eq.s32.totalorder %v484_v49, %v3272_v28 }
 0x12c   : > { %v2150_v52 = vsel %vm508_vm14, 1.0, %v2878_v25  ;;  %vm492_vm0 = vcmp.eq.s32.totalorder %v484_v49, %v3277_v30  ;;  %vm3363_vm12 = vmand %vm489_vm7, %vm504_vm8  ;;  %v673_v54 = vpop.permute.xlu1 %672  ;;  %v3367_v55 = vadd.f32 %v2156_v44, %v2148_v48  ;;  %v3369_v56 = vadd.f32 %v2157_v46, %v2149_v51 }
 0x12d   : > { %vm3373_vm9 = vmand %vm490_vm15, %vm504_vm8  ;;  %vm677_vm3 = vcmp.eq.s32.totalorder %v673_v54, 1  ;;  %v3379_v58 = vadd.f32 %v2158_v47, %v2150_v52  ;;  %vm661_vm14 = vcmp.eq.s32.totalorder %v3252_v1, %v3272_v28  ;;  %vm662_vm7 = vcmp.eq.s32.totalorder %v3252_v1, %v3277_v30 }
 0x12e   : > { %vm3383_vm5 = vmand %vm491_vm11, %vm504_vm8  ;;  %v560_v61 = vpop.permute.xlu0 %559  ;;  %v2167_v1 = vsel %vm3305_vm4, 1.0, %v2878_v25  ;;  %v2151_v10 = vsel %vm3363_vm12, 1.0, %v2878_v25  ;;  %vm4532_vm4 = vcmp.eq.s32.totalorder %v3241_v59, %v3267_v26  ;;  %v2152_v13 = vsel %vm3373_vm9, 1.0, %v2878_v25 }
 0x12f   : > { %vm3391_vm13 = vmand %vm492_vm0, %vm504_vm8  ;;  %vm4534_vm12 = vcmp.eq.s32.totalorder %v3241_v59, %v3272_v28  ;;  %v2153_v17 = vsel %vm3383_vm5, 1.0, %v2878_v25 }
 0x130   : > { %v4520_v62 = vsel %vm3391_vm13, 4294967295, %v4519_v62  ;;  %vm3400_vm15 = vmand %vm659_vm1, %vm677_vm3  ;;  %vm547_vm13 = vcmp.eq.s32.totalorder %v3241_v59, %v3260_v23 }
 0x131   : > { %vm3405_vm11 = vmand %vm660_vm2, %vm677_vm3  ;;  %v3409_v3 = vpop.permute.xlu1 %712 }
 0x132   : > { %v4524_v0 = vsel %vm3405_vm11, 4294967295, %v4523_v0  ;;  %vm3412_vm0 = vmand %vm661_vm14, %vm677_vm3  ;;  %vm550_vm11 = vcmp.eq.s32.totalorder %v3241_v59, %v3277_v30  ;;  %v615_v5 = vpop.permute.xlu0 %614  ;;  %vm601_vm14 = vcmp.eq.s32.totalorder %v3262_v24, %v3260_v23 }
 0x133   : > { %v4526_v4 = vsel %vm3412_vm0, 4294967295, %v4525_v4  ;;  %vm3425_vm8 = vmand %vm662_vm7, %vm677_vm3  ;;  %vm4529_vm3 = vnez %v4510_v39  ;;  %vm4530_vm7 = vcmp.eq.s32.totalorder %v560_v61, 1  ;;  %vm619_vm6 = vcmp.eq.s32.totalorder %v615_v5, 1 }
 0x134   : > { %v2169_v8 = vsel %vm4529_vm3, 1.0, %v2878_v25  ;;  %vm567_vm1 = vmand %vm547_vm13, %vm4530_vm7  ;;  %vm663_vm3 = vcmp.eq.s32.totalorder %v3327_v42, %v3260_v23  ;;  %v2171_v39 = vsel %vm3400_vm15, 1.0, %v2878_v25  ;;  %v2174_v52 = vsel %vm3425_vm8, 1.0, %v2878_v25 }
 0x135   : > { %vm4531_vm2 = vmmov %vm4530_vm7  ;;  %v2159_v11 = vsel %vm567_vm1, 1.0, %v2878_v25  ;;  %v3458_v12 = vpop.permute.xlu1 %715  ;;  %vm664_vm1 = vcmp.eq.s32.totalorder %v3327_v42, %v3267_v26  ;;  %vm4535_vm7 = vnez %v4520_v62 }
 0x136   : > { %vm568_vm0 = vmand %vm4532_vm4, %vm4531_vm2  ;;  %v591_v6 = vadd.f32 %v2159_v11, %v2151_v10  ;;  %v676_v16 = vpop.permute.xlu0 %675  ;;  %v2154_v20 = vsel %vm4535_vm7, 1.0, %v2878_v25  ;;  %vm4539_vm7 = vnez %v4524_v0 }
 0x137   : > { %vm4533_vm10 = vmmov %vm4531_vm2  ;;  %v2160_v14 = vsel %vm568_vm0, 1.0, %v2878_v25  ;;  %vm665_vm0 = vcmp.eq.s32.totalorder %v3327_v42, %v3272_v28  ;;  %v2172_v44 = vsel %vm4539_vm7, 1.0, %v2878_v25  ;;  %vm721_vm7 = vcmp.eq.s32.totalorder %v3458_v12, %v3260_v23 }
 0x138   : > { %vm569_vm13 = vmand %vm4534_vm12, %vm4533_vm10  ;;  %v592_v19 = vadd.f32 %v2160_v14, %v2152_v13  ;;  %v649_v59 = vadd.f32 %v2167_v1, %v591_v6  ;;  %vm678_vm10 = vcmp.eq.s32.totalorder %v676_v16, 1  ;;  %vm4537_vm12 = vcmp.eq.s32.totalorder %v3262_v24, %v3272_v28 }
 0x139   : > { %vm570_vm9 = vmand %vm550_vm11, %vm4531_vm2  ;;  %v2161_v18 = vsel %vm569_vm13, 1.0, %v2878_v25  ;;  %vm4536_vm11 = vcmp.eq.s32.totalorder %v3262_v24, %v3267_v26  ;;  %vm4538_vm2 = vcmp.eq.s32.totalorder %v3262_v24, %v3277_v30  ;;  %v4549_v14 = vmov 0 }
 0x13a   : > { %v2162_v21 = vsel %vm570_vm9, 1.0, %v2878_v25  ;;  %v593_v29 = vadd.f32 %v2161_v18, %v2153_v17  ;;  %vm621_vm5 = vmand %vm601_vm14, %vm619_vm6  ;;  %v650_v34 = vadd.f32 %v2168_v2, %v592_v19  ;;  %vm666_vm14 = vcmp.eq.s32.totalorder %v3327_v42, %v3277_v30  ;;  %v734_v38 = vpop.permute.xlu1 %733  ;;  %v731_v47 = vpop.permute.xlu0 %730 }
 0x13b   : > { %v594_v31 = vadd.f32 %v2162_v21, %v2154_v20  ;;  %vm622_vm4 = vmand %vm4536_vm11, %vm619_vm6  ;;  %v2163_v32 = vsel %vm621_vm5, 1.0, %v2878_v25  ;;  %vm735_vm8 = vcmp.eq.s32.totalorder %v731_v47, 1  ;;  %v4551_v16 = vmov 0 }
 0x13c   : > { %vm623_vm13 = vmand %vm4537_vm12, %vm619_vm6  ;;  %v2164_v35 = vsel %vm622_vm4, 1.0, %v2878_v25  ;;  %v645_v36 = vadd.f32 %v2163_v32, %v3351_v50  ;;  %v651_v37 = vadd.f32 %v2169_v8, %v593_v29  ;;  %vm736_vm4 = vcmp.eq.s32.totalorder %v734_v38, 1 }
 0x13d   : > { %vm624_vm9 = vmand %vm4538_vm2, %vm619_vm6  ;;  %v2165_v40 = vsel %vm623_vm13, 1.0, %v2878_v25  ;;  %v646_v41 = vadd.f32 %v2164_v35, %v3367_v55  ;;  %v652_v43 = vadd.f32 %v2170_v9, %v594_v31  ;;  %vm4540_vm6 = vnez %v4526_v4 }
 0x13e   : > { %v2166_v45 = vsel %vm624_vm9, 1.0, %v2878_v25  ;;  %v647_v46 = vadd.f32 %v2165_v40, %v3369_v56  ;;  %vm683_vm15 = vmand %vm663_vm3, %vm678_vm10  ;;  %v3521_v24 = vadd.f32 %v2171_v39, %v645_v36  ;;  %v2173_v48 = vsel %vm4540_vm6, 1.0, %v2878_v25  ;;  %v792_v8 = vpop.permute.xlu0 %791 }
 0x13f   : > { %v648_v49 = vadd.f32 %v2166_v45, %v3379_v58  ;;  %vm684_vm5 = vmand %vm664_vm1, %vm678_vm10  ;;  %v2175_v50 = vsel %vm683_vm15, 1.0, %v2878_v25  ;;  %v3532_v51 = vadd.f32 %v2172_v44, %v646_v41  ;;  %v774_v60 = vpop.permute.xlu1 %773  ;;  %vm718_vm12 = vcmp.eq.s32.totalorder %v3409_v3, %v3267_v26 }
 0x140   : > { %vm685_vm3 = vmand %vm665_vm0, %vm678_vm10  ;;  %v2176_v53 = vsel %vm684_vm5, 1.0, %v2878_v25  ;;  %v3542_v54 = vadd.f32 %v2175_v50, %v649_v59  ;;  %v705_v55 = vadd.f32 %v2173_v48, %v647_v46  ;;  %vm719_vm0 = vcmp.eq.s32.totalorder %v3409_v3, %v3272_v28 }
 0x141   : > { %vm686_vm1 = vmand %vm666_vm14, %vm678_vm10  ;;  %v2177_v56 = vsel %vm685_vm3, 1.0, %v2878_v25  ;;  %v3549_v57 = vadd.f32 %v2176_v53, %v650_v34  ;;  %v3551_v58 = vadd.f32 %v2174_v52, %v648_v49  ;;  %vm717_vm10 = vcmp.eq.s32.totalorder %v3409_v3, %v3260_v23 }
 0x142   : > { %v2178_v61 = vsel %vm686_vm1, 1.0, %v2878_v25  ;;  %v3554_v62 = vadd.f32 %v2177_v56, %v651_v37  ;;  %vm739_vm11 = vmand %vm719_vm0, %vm735_vm8  ;;  %vm720_vm13 = vcmp.eq.s32.totalorder %v3409_v3, %v3277_v30  ;;  %vm722_vm15 = vcmp.eq.s32.totalorder %v3458_v12, %v3267_v26  ;;  %v847_v6 = vpop.permute.xlu0 %846 }
 0x143   : > { %v3556_v63 = vadd.f32 %v2178_v61, %v652_v43  ;;  %v2181_v42 = vsel %vm739_vm11, 1.0, %v2878_v25  ;;  %vm3581_vm14 = vmand %vm717_vm10, %vm735_vm8  ;;  %v4547_v3 = vmov 0  ;;  %vm723_vm5 = vcmp.eq.s32.totalorder %v3458_v12, %v3272_v28 }
 0x144   : > { %v3562_v0 = vadd.f32 %v2181_v42, %v705_v55  ;;  %v789_v4 = vpop.permute.xlu1 %788  ;;  %vm3586_vm2 = vmand %vm718_vm12, %vm735_vm8  ;;  %vm779_vm1 = vcmp.eq.s32.totalorder %v774_v60, %v3260_v23  ;;  %vm724_vm0 = vcmp.eq.s32.totalorder %v3458_v12, %v3277_v30  ;;  %vm780_vm10 = vcmp.eq.s32.totalorder %v774_v60, %v3267_v26 }
 0x145   : > { %vm3591_vm9 = vmand %vm720_vm13, %vm735_vm8  ;;  %vm794_vm8 = vcmp.eq.s32.totalorder %v792_v8, 1  ;;  %v4553_v18 = vmov 0  ;;  %vm781_vm13 = vcmp.eq.s32.totalorder %v774_v60, %v3272_v28  ;;  %v4555_v12 = vmov 0 }
 0x146   : > { %vm3600_vm6 = vmand %vm721_vm7, %vm736_vm4  ;;  %vm782_vm7 = vcmp.eq.s32.totalorder %v774_v60, %v3277_v30  ;;  %v4557_v19 = vmov 0  ;;  %v4559_v20 = vmov 0  ;;  %v2179_v35 = vsel %vm3581_vm14, 1.0, %v2878_v25 }
 0x147   : > { %v4548_v3 = vsel %vm3600_vm6, 4294967295, %v4547_v3  ;;  %vm3607_vm3 = vmand %vm722_vm15, %vm736_vm4  ;;  %v2180_v36 = vsel %vm3586_vm2, 1.0, %v2878_v25  ;;  %v2182_v37 = vsel %vm3591_vm9, 1.0, %v2878_v25  ;;  %v4581_v46 = vmov 0 }
 0x148   : > { %v4550_v14 = vsel %vm3607_vm3, 4294967295, %v4549_v14  ;;  %vm3615_vm11 = vmand %vm723_vm5, %vm736_vm4  ;;  %vm775_vm5 = vcmp.eq.s32.totalorder %v3256_v15, %v3260_v23  ;;  %vm793_vm3 = vcmp.eq.s32.totalorder %v789_v4, 1  ;;  %v4585_v50 = vmov 0 }
 0x149   : > { %v3564_v5 = vpop.permute.xlu1 %828  ;;  %v4552_v16 = vsel %vm3615_vm11, 4294967295, %v4551_v16  ;;  %vm3623_vm12 = vmand %vm724_vm0, %vm736_vm4  ;;  %vm776_vm11 = vcmp.eq.s32.totalorder %v3256_v15, %v3267_v26  ;;  %vm777_vm0 = vcmp.eq.s32.totalorder %v3256_v15, %v3272_v28  ;;  %vm4587_vm9 = vcmp.eq.s32.totalorder %v847_v6, 1 }
 0x14a   : > { %v4554_v18 = vsel %vm3623_vm12, 4294967295, %v4553_v18  ;;  %vm3630_vm15 = vmand %vm779_vm1, %vm794_vm8  ;;  %vm4576_vm2 = vnez %v4552_v16  ;;  %v4589_v52 = vmov 0  ;;  %v4591_v53 = vmov 0 }
 0x14b   : > { %v4556_v12 = vsel %vm3630_vm15, 4294967295, %v4555_v12  ;;  %vm3639_vm4 = vmand %vm780_vm10, %vm794_vm8  ;;  %vm778_vm15 = vcmp.eq.s32.totalorder %v3256_v15, %v3277_v30  ;;  %v908_v15 = vpop.permute.xlu0 %907  ;;  %v2185_v41 = vsel %vm4576_vm2, 1.0, %v2878_v25  ;;  %v4595_v60 = vmov 0 }
 0x14c   : > { %v4558_v19 = vsel %vm3639_vm4, 4294967295, %v4557_v19  ;;  %vm3646_vm1 = vmand %vm781_vm13, %vm794_vm8  ;;  %vm4575_vm13 = vnez %v4550_v14  ;;  %v4598_v61 = vmov 0  ;;  %v764_v42 = vadd.f32 %v2182_v37, %v3551_v58 }
 0x14d   : > { %v3566_v7 = vpop.permute.xlu1 %831  ;;  %v4560_v20 = vsel %vm3646_vm1, 4294967295, %v4559_v20  ;;  %vm3655_vm12 = vmand %vm782_vm7, %vm794_vm8  ;;  %vm833_vm1 = vcmp.eq.s32.totalorder %v3564_v5, %v3260_v23  ;;  %vm834_vm8 = vcmp.eq.s32.totalorder %v3564_v5, %v3267_v26  ;;  %v2184_v40 = vsel %vm4575_vm13, 1.0, %v2878_v25 }
 0x14e   : > { %vm3659_vm10 = vmand %vm775_vm5, %vm793_vm3  ;;  %vm4580_vm13 = vnez %v4554_v18  ;;  %vm838_vm14 = vcmp.eq.s32.totalorder %v3566_v7, %v3267_v26  ;;  %vm839_vm2 = vcmp.eq.s32.totalorder %v3566_v7, %v3272_v28  ;;  %v766_v56 = vadd.f32 %v2184_v40, %v3549_v57 }
 0x14f   : > { %vm3663_vm4 = vmand %vm776_vm11, %vm793_vm3  ;;  %v2186_v45 = vsel %vm4580_vm13, 1.0, %v2878_v25  ;;  %vm4584_vm13 = vnez %v4558_v19  ;;  %v3739_v49 = vpop.permute.xlu0 %962  ;;  %v762_v57 = vadd.f32 %v2180_v36, %v3532_v51  ;;  %v2187_v11 = vsel %vm3659_vm10, 1.0, %v2878_v25 }
 0x150   : > { %vm3669_vm6 = vmand %vm777_vm0, %vm793_vm3  ;;  %v2192_v48 = vsel %vm4584_vm13, 1.0, %v2878_v25  ;;  %vm840_vm13 = vcmp.eq.s32.totalorder %v3566_v7, %v3277_v30  ;;  %v768_v51 = vadd.f32 %v2186_v45, %v3556_v63  ;;  %v2194_v63 = vsel %vm3655_vm12, 1.0, %v2878_v25 }
 0x151   : > { %vm3675_vm7 = vmand %vm778_vm15, %vm793_vm3  ;;  %vm4571_vm3 = vnez %v4548_v3  ;;  %vm4572_vm15 = vcmp.eq.s32.totalorder %v847_v6, 1  ;;  %v824_v58 = vadd.f32 %v2192_v48, %v766_v56  ;;  %v2188_v13 = vsel %vm3663_vm4, 1.0, %v2878_v25 }
 0x152   : > { %v3568_v1 = vpop.permute.xlu1 %849  ;;  %v2183_v38 = vsel %vm4571_vm3, 1.0, %v2878_v25  ;;  %vm3697_vm0 = vmand %vm833_vm1, %vm4572_vm15  ;;  %vm837_vm1 = vcmp.eq.s32.totalorder %v3566_v7, %v3260_v23  ;;  %vm4621_vm12 = vcmp.eq.s32.totalorder %v3258_v22, %v3267_v26  ;;  %v2189_v6 = vsel %vm3669_vm6, 1.0, %v2878_v25 }
 0x153   : > { %vm4476_vm11 = vcmp.eq.s32.totalorder %v3568_v1, 1  ;;  %vm4577_vm3 = vmmov %vm4572_vm15  ;;  %v765_v55 = vadd.f32 %v2183_v38, %v3542_v54  ;;  %v761_v54 = vadd.f32 %v2179_v35, %v3521_v24  ;;  %v767_v24 = vadd.f32 %v2185_v41, %v3554_v62  ;;  %v3866_v16 = vpop.permute.xlu0 %1023 }
 0x154   : > { %vm3712_vm5 = vmand %vm834_vm8, %vm4577_vm3  ;;  %vm4583_vm3 = vnez %v4556_v12  ;;  %v2190_v12 = vsel %vm3675_vm7, 1.0, %v2878_v25  ;;  %v2195_v19 = vsel %vm3697_vm0, 1.0, %v2878_v25  ;;  %vm4477_vm6 = vcmp.eq.s32.totalorder %v3739_v49, 1 }
 0x155   : > { %vm3729_vm8 = vmand %vm837_vm1, %vm4476_vm11  ;;  %v2191_v47 = vsel %vm4583_vm3, 1.0, %v2878_v25  ;;  %vm4588_vm3 = vcmp.eq.s32.totalorder %v3564_v5, %v3272_v28  ;;  %vm4597_vm1 = vcmp.eq.s32.totalorder %v3568_v1, 1  ;;  %v826_v29 = vadd.f32 %v2194_v63, %v768_v51 }
 0x156   : > { %v4582_v46 = vsel %vm3729_vm8, 4294967295, %v4581_v46  ;;  %vm3745_vm15 = vmand %vm838_vm14, %vm4476_vm11  ;;  %v823_v1 = vadd.f32 %v2191_v47, %v765_v55  ;;  %v819_v59 = vadd.f32 %v2187_v11, %v761_v54  ;;  %v820_v31 = vadd.f32 %v2188_v13, %v762_v57 }
 0x157   : > { %v3570_v2 = vpop.permute.xlu1 %889  ;;  %v4586_v50 = vsel %vm3745_vm15, 4294967295, %v4585_v50  ;;  %vm3755_vm8 = vmand %vm4588_vm3, %vm4587_vm9  ;;  %v2196_v32 = vsel %vm3712_vm5, 1.0, %v2878_v25  ;;  %v4634_v34 = vmov 0  ;;  %v822_v35 = vadd.f32 %v2190_v12, %v764_v42  ;;  %v3981_v45 = vpop.permute.xlu0 %1078 }
 0x158   : > { %v4590_v52 = vsel %vm3755_vm8, 4294967295, %v4589_v52  ;;  %vm3763_vm14 = vmand %vm839_vm2, %vm4476_vm11  ;;  %vm4594_vm2 = vcmp.eq.s32.totalorder %v3564_v5, %v3277_v30  ;;  %v4603_v5 = vmov 0  ;;  %v877_v37 = vadd.f32 %v2195_v19, %v819_v59 }
 0x159   : > { %v4592_v53 = vsel %vm3763_vm14, 4294967295, %v4591_v53  ;;  %vm4593_vm3 = vmmov %vm4587_vm9  ;;  %v4641_v38 = vmov 0  ;;  %v4647_v41 = vmov 0  ;;  %v4654_v47 = vmov 0 }
 0x15a   : > { %vm3779_vm11 = vmand %vm4594_vm2, %vm4593_vm3  ;;  %vm4600_vm3 = vnez %v4560_v20  ;;  %vm4601_vm2 = vcmp.eq.s32.totalorder %v908_v15, 1  ;;  %v821_v15 = vadd.f32 %v2189_v6, %v3562_v0  ;;  %v4637_v0 = vmov 0 }
 0x15b   : > { %v4596_v60 = vsel %vm3779_vm11, 4294967295, %v4595_v60  ;;  %vm3785_vm8 = vmand %vm840_vm13, %vm4597_vm1  ;;  %v2193_v4 = vsel %vm4600_vm3, 1.0, %v2878_v25  ;;  %vm4602_vm1 = vcmp.eq.s32.totalorder %v3570_v2, %v3260_v23  ;;  %vm4606_vm3 = vcmp.eq.s32.totalorder %v3570_v2, %v3267_v26  ;;  %v4077_v11 = vpop.permute.xlu0 %1139 }
 0x15c   : > { %v3572_v9 = vpop.permute.xlu1 %904  ;;  %v4599_v61 = vsel %vm3785_vm8, 4294967295, %v4598_v61  ;;  %vm3802_vm13 = vmand %vm4602_vm1, %vm4601_vm2  ;;  %vm4609_vm1 = vcmp.eq.s32.totalorder %v3570_v2, %v3272_v28  ;;  %vm4613_vm11 = vcmp.eq.s32.totalorder %v3570_v2, %v3277_v30  ;;  %v825_v14 = vadd.f32 %v2193_v4, %v767_v24 }
 0x15d   : > { %v4604_v5 = vsel %vm3802_vm13, 4294967295, %v4603_v5  ;;  %vm4605_vm9 = vmmov %vm4601_vm2 }
 0x15e   : > { %vm3814_vm15 = vmand %vm4606_vm3, %vm4605_vm9  ;;  %vm4616_vm9 = vcmp.eq.s32.totalorder %v3572_v9, 1  ;;  %v4632_v9 = vmov 0 }
 0x15f   : > { %vm3822_vm13 = vmand %vm4609_vm1, %vm4601_vm2  ;;  %vm4625_vm1 = vcmp.eq.s32.totalorder %v3258_v22, %v3272_v28 }
 0x160   : > { %vm4612_vm8 = vmmov %vm4601_vm2 }
 0x161   : > { %v3620_v17 = vpop.permute.xlu1 %944  ;;  %vm3830_vm14 = vmand %vm4613_vm11, %vm4612_vm8  ;;  %vm4617_vm11 = vcmp.eq.s32.totalorder %v3258_v22, %v3260_v23 }
 0x162   : > { %vm3848_vm8 = vmand %vm4617_vm11, %vm4616_vm9  ;;  %vm949_vm4 = vcmp.eq.s32.totalorder %v3620_v17, %v3260_v23  ;;  %vm950_vm11 = vcmp.eq.s32.totalorder %v3620_v17, %v3267_v26  ;;  %v2210_v54 = vsel %vm3830_vm14, 1.0, %v2878_v25 }
 0x163   : > { %vm4620_vm3 = vmmov %vm4616_vm9  ;;  %v2203_v4 = vsel %vm3848_vm8, 1.0, %v2878_v25 }
 0x164   : > { %vm3857_vm2 = vmand %vm4621_vm12, %vm4620_vm3  ;;  %v935_v6 = vadd.f32 %v2203_v4, %v877_v37 }
 0x165   : > { %v3652_v21 = vpop.permute.xlu1 %947  ;;  %vm4624_vm10 = vmmov %vm4620_vm3 }
 0x166   : > { %vm3873_vm9 = vmand %vm4625_vm1, %vm4624_vm10  ;;  %vm4629_vm10 = vcmp.eq.s32.totalorder %v3258_v22, %v3277_v30  ;;  %vm953_vm5 = vcmp.eq.s32.totalorder %v3652_v21, %v3260_v23 }
 0x167   : > { %vm4628_vm12 = vmmov %vm4620_vm3  ;;  %vm954_vm3 = vcmp.eq.s32.totalorder %v3652_v21, %v3267_v26  ;;  %v2205_v24 = vsel %vm3873_vm9, 1.0, %v2878_v25  ;;  %vm4675_vm9 = vcmp.eq.s32.totalorder %v3269_v27, %v3260_v23 }
 0x168   : > { %vm3893_vm1 = vmand %vm4629_vm10, %vm4628_vm12  ;;  %vm4643_vm12 = vnez %v4586_v50 }
 0x169   : > { %vm3905_vm0 = vmand %vm949_vm4, %vm4477_vm6  ;;  %vm4636_vm4 = vcmp.eq.s32.totalorder %v3620_v17, %v3272_v28  ;;  %v2200_v39 = vsel %vm4643_vm12, 1.0, %v2878_v25  ;;  %v2206_v8 = vsel %vm3893_vm1, 1.0, %v2878_v25 }
 0x16a   : > { %v3718_v44 = vpop.permute.xlu1 %965  ;;  %v4633_v9 = vsel %vm3905_vm0, 4294967295, %v4632_v9  ;;  %vm3921_vm10 = vmand %vm950_vm11, %vm4477_vm6  ;;  %vm4639_vm11 = vnez %v4582_v46  ;;  %vm4646_vm0 = vcmp.eq.s32.totalorder %v3620_v17, %v3277_v30  ;;  %v878_v46 = vadd.f32 %v2196_v32, %v820_v31 }
 0x16b   : > { %v4635_v34 = vsel %vm3921_vm10, 4294967295, %v4634_v34  ;;  %vm3930_vm7 = vmand %vm4636_vm4, %vm4477_vm6  ;;  %v2199_v36 = vsel %vm4639_vm11, 1.0, %v2878_v25  ;;  %vm4640_vm4 = vcmp.eq.s32.totalorder %v3718_v44, 1  ;;  %vm4644_vm11 = vnez %v4592_v53 }
 0x16c   : > { %v4638_v0 = vsel %vm3930_vm7, 4294967295, %v4637_v0  ;;  %vm3945_vm6 = vmand %vm953_vm5, %vm4640_vm4  ;;  %v2201_v40 = vsel %vm4644_vm11, 1.0, %v2878_v25  ;;  %vm4645_vm10 = vcmp.eq.s32.totalorder %v3739_v49, 1  ;;  %vm955_vm4 = vcmp.eq.s32.totalorder %v3652_v21, %v3272_v28 }
 0x16d   : > { %v4642_v38 = vsel %vm3945_vm6, 4294967295, %v4641_v38  ;;  %vm3962_vm5 = vmand %vm4646_vm0, %vm4645_vm10  ;;  %vm4649_vm7 = vcmp.eq.s32.totalorder %v3718_v44, 1  ;;  %vm4652_vm0 = vnez %v4590_v52  ;;  %vm956_vm10 = vcmp.eq.s32.totalorder %v3652_v21, %v3277_v30 }
 0x16e   : > { %v4648_v41 = vsel %vm3962_vm5, 4294967295, %v4647_v41  ;;  %vm3970_vm6 = vmand %vm954_vm3, %vm4649_vm7  ;;  %v2197_v17 = vsel %vm4652_vm0, 1.0, %v2878_v25  ;;  %vm4656_vm0 = vnez %v4596_v60  ;;  %vm4657_vm5 = vnez %v4599_v61 }
 0x16f   : > { %v3806_v7 = vpop.permute.xlu1 %1005  ;;  %vm4653_vm3 = vmmov %vm4649_vm7  ;;  %v2198_v48 = vsel %vm4656_vm0, 1.0, %v2878_v25  ;;  %v2202_v21 = vsel %vm4657_vm5, 1.0, %v2878_v25  ;;  %v881_v49 = vadd.f32 %v2199_v36, %v823_v1  ;;  %v882_v53 = vadd.f32 %v2200_v39, %v824_v58 }
 0x170   : > { %vm3987_vm7 = vmand %vm955_vm4, %vm4653_vm3  ;;  %vm1012_vm12 = vcmp.eq.s32.totalorder %v3806_v7, %v3267_v26  ;;  %vm1013_vm11 = vcmp.eq.s32.totalorder %v3806_v7, %v3272_v28  ;;  %v883_v55 = vadd.f32 %v2201_v40, %v825_v14  ;;  %vm4660_vm0 = vnez %v4604_v5 }
 0x171   : > { %v4655_v47 = vsel %vm3987_vm7, 4294967295, %v4654_v47  ;;  %vm4004_vm7 = vmand %vm956_vm10, %vm4653_vm3  ;;  %v2207_v56 = vsel %vm4660_vm0, 1.0, %v2878_v25  ;;  %vm1014_vm5 = vcmp.eq.s32.totalorder %v3806_v7, %v3277_v30  ;;  %vm4661_vm4 = vcmp.eq.s32.totalorder %v3866_v16, 1 }
 0x172   : > { %vm4662_vm10 = vcmp.eq.s32.totalorder %v3806_v7, %v3260_v23  ;;  %v2208_v60 = vsel %vm3814_vm15, 1.0, %v2878_v25  ;;  %v2209_v61 = vsel %vm3822_vm13, 1.0, %v2878_v25  ;;  %vm4665_vm0 = vmmov %vm4661_vm4  ;;  %v884_v42 = vadd.f32 %v2202_v21, %v826_v29 }
 0x173   : > { %vm4022_vm3 = vmand %vm4662_vm10, %vm4661_vm4  ;;  %v2204_v5 = vsel %vm3857_vm2, 1.0, %v2878_v25  ;;  %v879_v1 = vadd.f32 %v2197_v17, %v821_v15  ;;  %v880_v58 = vadd.f32 %v2198_v48, %v822_v35  ;;  %v939_v10 = vadd.f32 %v2207_v56, %v881_v49  ;;  %v2639_v49 = vld [vmem:[%s4457_s3 + $0x18] sm:$0xff]  }
 0x174   : > { %v3909_v22 = vpop.permute.xlu1 %1020  ;;  %vm4040_vm4 = vmand %vm1012_vm12, %vm4665_vm0  ;;  %vm4674_vm2 = vnez %v4633_v9  ;;  %v940_v2 = vadd.f32 %v2208_v60, %v882_v53  ;;  %v941_v3 = vadd.f32 %v2209_v61, %v883_v55  ;;  %v942_v14 = vadd.f32 %v2210_v54, %v884_v42  ;;  %v2641_v53 = vld [vmem:[%s4457_s3 + $0x28] sm:$0xff]   ;;  %v2647_v60 = vld [vmem:[#allocation5 + $0x18] sm:$0xff]  }
 0x175   : > { %vm1025_vm10 = vcmp.eq.s32.totalorder %v3909_v22, 1  ;;  %vm4668_vm15 = vmmov %vm4665_vm0  ;;  %v2211_v13 = vsel %vm4674_vm2, 1.0, %v2878_v25  ;;  %v936_v16 = vadd.f32 %v2204_v5, %v878_v46  ;;  %v937_v18 = vadd.f32 %v2205_v24, %v879_v1 }
 0x176   : > { %vm4059_vm14 = vmand %vm1013_vm11, %vm4668_vm15  ;;  %vm4678_vm12 = vcmp.eq.s32.totalorder %v3269_v27, %v3267_v26  ;;  %v938_v19 = vadd.f32 %v2206_v8, %v880_v58  ;;  %vm4682_vm15 = vnez %v4638_v0  ;;  %v2216_v9 = vsel %vm3970_vm6, 1.0, %v2878_v25 }
 0x177   : > { %vm4671_vm13 = vmmov %vm4665_vm0  ;;  %vm4681_vm0 = vnez %v4635_v34  ;;  %v2213_v29 = vsel %vm4682_vm15, 1.0, %v2878_v25  ;;  %v993_v15 = vadd.f32 %v2211_v13, %v935_v6  ;;  %vm4687_vm15 = vcmp.eq.s32.totalorder %v3269_v27, %v3277_v30 }
 0x178   : > { %vm4071_vm8 = vmand %vm1014_vm5, %vm4671_vm13  ;;  %v2212_v20 = vsel %vm4681_vm0, 1.0, %v2878_v25  ;;  %vm4683_vm13 = vcmp.eq.s32.totalorder %v3269_v27, %v3272_v28  ;;  %vm4686_vm0 = vnez %v4642_v38  ;;  %vm4691_vm6 = vnez %v4655_v47 }
 0x179   : > { %v4010_v52 = vpop.permute.xlu1 %1060  ;;  %vm4087_vm1 = vmand %vm4675_vm9, %vm1025_vm10  ;;  %v2215_v31 = vsel %vm4686_vm0, 1.0, %v2878_v25  ;;  %vm4690_vm0 = vnez %v4648_v41  ;;  %v2217_v0 = vsel %vm4691_vm6, 1.0, %v2878_v25  ;;  %v2218_v22 = vsel %vm4004_vm7, 1.0, %v2878_v25 }
 0x17a   : > { %vm4096_vm11 = vmand %vm4678_vm12, %vm1025_vm10  ;;  %vm1065_vm5 = vcmp.eq.s32.totalorder %v4010_v52, %v3260_v23  ;;  %vm1067_vm9 = vcmp.eq.s32.totalorder %v4010_v52, %v3272_v28  ;;  %v2214_v34 = vsel %vm4690_vm0, 1.0, %v2878_v25  ;;  %v2223_v36 = vsel %vm4022_vm3, 1.0, %v2878_v25 }
 0x17b   : > { %vm4113_vm2 = vmand %vm4683_vm13, %vm1025_vm10  ;;  %v995_v37 = vadd.f32 %v2213_v29, %v937_v18  ;;  %v2224_v39 = vsel %vm4040_vm4, 1.0, %v2878_v25  ;;  %v997_v40 = vadd.f32 %v2215_v31, %v939_v10  ;;  %v998_v41 = vadd.f32 %v2216_v9, %v940_v2 }
 0x17c   : > { %vm4131_vm13 = vmand %vm4687_vm15, %vm1025_vm10  ;;  %vm1068_vm10 = vcmp.eq.s32.totalorder %v4010_v52, %v3277_v30  ;;  %vm4692_vm15 = vcmp.eq.s32.totalorder %v3981_v45, 1  ;;  %v2225_v43 = vsel %vm4059_vm14, 1.0, %v2878_v25  ;;  %v994_v17 = vadd.f32 %v2212_v20, %v936_v16 }
 0x17d   : > { %v4075_v63 = vpop.permute.xlu1 %1063  ;;  %vm4153_vm12 = vmand %vm1065_vm5, %vm4692_vm15  ;;  %vm4699_vm5 = vcmp.eq.s32.totalorder %v4010_v52, %v3267_v26  ;;  %v999_v47 = vadd.f32 %v2217_v0, %v941_v3  ;;  %v1000_v48 = vadd.f32 %v2218_v22, %v942_v14  ;;  %v996_v21 = vadd.f32 %v2214_v34, %v938_v19  ;;  %v2652_v19 = vld [vmem:[#allocation7] sm:$0xff]  }
 0x17e   : > { %vm4695_vm7 = vmmov %vm4692_vm15  ;;  %vm1069_vm4 = vcmp.eq.s32.totalorder %v4075_v63, %v3260_v23  ;;  %v1055_v50 = vadd.f32 %v2223_v36, %v997_v40  ;;  %v1056_v45 = vadd.f32 %v2224_v39, %v998_v41  ;;  %v2226_v52 = vsel %vm4071_vm8, 1.0, %v2878_v25 }
 0x17f   : > { %vm4165_vm0 = vmand %vm1067_vm9, %vm4695_vm7  ;;  %v2219_v55 = vsel %vm4087_vm1, 1.0, %v2878_v25  ;;  %v2220_v56 = vsel %vm4096_vm11, 1.0, %v2878_v25  ;;  %v1057_v44 = vadd.f32 %v2225_v43, %v999_v47  ;;  %vm1124_vm8 = vcmp.eq.s32.totalorder %v3293_v33, %v3267_v26 }
 0x180   : > { %vm4698_vm3 = vmmov %vm4695_vm7  ;;  %v2221_v54 = vsel %vm4113_vm2, 1.0, %v2878_v25  ;;  %vm1072_vm1 = vcmp.eq.s32.totalorder %v4075_v63, %v3277_v30  ;;  %v2222_v42 = vsel %vm4131_vm13, 1.0, %v2878_v25  ;;  %v2227_v4 = vsel %vm4153_vm12, 1.0, %v2878_v25 }
 0x181   : > { %vm4180_vm9 = vmand %vm4699_vm5, %vm4698_vm3  ;;  %v1058_v24 = vadd.f32 %v2226_v52, %v1000_v48  ;;  %v1051_v51 = vadd.f32 %v2219_v55, %v993_v15  ;;  %v2229_v1 = vsel %vm4165_vm0, 1.0, %v2878_v25  ;;  %vm4713_vm15 = vcmp.eq.s32.totalorder %v4077_v11, 1  ;;  %v2636_v48 = vld [vmem:[%s4457_s3] sm:$0xff]   ;;  %v2643_v52 = vld [vmem:[%s4457_s3 + $0x38] sm:$0xff]  }
 0x182   : > { %v1082_v35 = vpop.permute.xlu1 %1081  ;;  %vm4702_vm14 = vmmov %vm4698_vm3  ;;  %vm1070_vm3 = vcmp.eq.s32.totalorder %v4075_v63, %v3267_v26  ;;  %v2228_v8 = vsel %vm4180_vm9, 1.0, %v2878_v25  ;;  %v1053_v10 = vadd.f32 %v2221_v54, %v995_v37  ;;  %v1052_v13 = vadd.f32 %v2220_v56, %v994_v17  ;;  %v2644_v55 = vld [vmem:[#allocation5] sm:$0xff]   ;;  %v2645_v56 = vld [vmem:[#allocation5 + $0x8] sm:$0xff]  }
 0x183   : > { %vm1084_vm6 = vcmp.eq.s32.totalorder %v1082_v35, 1  ;;  %vm4193_vm7 = vmand %vm1068_vm10, %vm4702_vm14  ;;  %vm1071_vm10 = vcmp.eq.s32.totalorder %v4075_v63, %v3272_v28  ;;  %v1054_v16 = vadd.f32 %v2222_v42, %v996_v21  ;;  %v1109_v18 = vadd.f32 %v2227_v4, %v1051_v51  ;;  %v2649_v54 = vld [vmem:[#allocation5 + $0x28] sm:$0xff]  }
 0x184   : > { %vm4200_vm5 = vmand %vm1069_vm4, %vm1084_vm6  ;;  %v2230_v2 = vsel %vm4193_vm7, 1.0, %v2878_v25  ;;  %v1110_v12 = vadd.f32 %v2228_v8, %v1052_v13  ;;  %v1111_v29 = vadd.f32 %v2229_v1, %v1053_v10 }
 0x185   : > { %vm4218_vm4 = vmand %vm1070_vm3, %vm1084_vm6  ;;  %v2231_v62 = vsel %vm4200_vm5, 1.0, %v2878_v25  ;;  %v1112_v11 = vadd.f32 %v2230_v2, %v1054_v16 }
 0x186   : > { %vm4230_vm11 = vmand %vm1071_vm10, %vm1084_vm6  ;;  %v2232_v7 = vsel %vm4218_vm4, 1.0, %v2878_v25  ;;  %v1113_v59 = vadd.f32 %v2231_v62, %v1055_v50  ;;  %vm4725_vm4 = vcmp.eq.s32.totalorder %v3293_v33, %v3260_v23  ;;  %v2640_v50 = vld [vmem:[%s4457_s3 + $0x20] sm:$0xff]  }
 0x187   : > { %v1122_v61 = vpop.permute.xlu1 %1121  ;;  %vm4245_vm2 = vmand %vm1072_vm1, %vm1084_vm6  ;;  %v2233_v3 = vsel %vm4230_vm11, 1.0, %v2878_v25  ;;  %v1114_v34 = vadd.f32 %v2232_v7, %v1056_v45  ;;  %v2642_v45 = vld [vmem:[%s4457_s3 + $0x30] sm:$0xff]  }
 0x188   : > { %vm1127_vm14 = vcmp.eq.s32.totalorder %v1122_v61, %v3260_v23  ;;  %vm1129_vm3 = vcmp.eq.s32.totalorder %v1122_v61, %v3272_v28  ;;  %vm1128_vm10 = vcmp.eq.s32.totalorder %v1122_v61, %v3267_v26  ;;  %vm1130_vm12 = vcmp.eq.s32.totalorder %v1122_v61, %v3277_v30  ;;  %vm4716_vm6 = vmmov %vm4713_vm15  ;;  %v2648_v61 = vld [vmem:[#allocation5 + $0x20] sm:$0xff]  }
 0x189   : > { %vm4255_vm13 = vmand %vm1127_vm14, %vm4713_vm15  ;;  %v2234_v31 = vsel %vm4245_vm2, 1.0, %v2878_v25  ;;  %v1115_v15 = vadd.f32 %v2233_v3, %v1057_v44  ;;  %vm4726_vm14 = vcmp.eq.s32.totalorder %v3293_v33, %v3272_v28  ;;  %v2646_v44 = vld [vmem:[#allocation5 + $0x10] sm:$0xff]  }
 0x18a   : > { %vm4268_vm0 = vmand %vm1129_vm3, %vm4716_vm6  ;;  %v2239_v20 = vsel %vm4255_vm13, 1.0, %v2878_v25  ;;  %v1116_v36 = vadd.f32 %v2234_v31, %v1058_v24  ;;  %v2656_v31 = vld [vmem:[#allocation7 + $0x20] sm:$0xff]  }
 0x18b   : > { %vm4719_vm9 = vmmov %vm4716_vm6  ;;  %v2241_v9 = vsel %vm4268_vm0, 1.0, %v2878_v25  ;;  %v1171_v27 = vadd.f32 %v2239_v20, %v1113_v59  ;;  %v2653_v20 = vld [vmem:[#allocation7 + $0x8] sm:$0xff]   ;;  %v2655_v59 = vld [vmem:[#allocation7 + $0x18] sm:$0xff]  }
 0x18c   : > { %v1137_v14 = vpop.permute.xlu1 %1136  ;;  %vm4285_vm15 = vmand %vm1128_vm10, %vm4719_vm9  ;;  %vm4727_vm10 = vcmp.eq.s32.totalorder %v3293_v33, %v3277_v30  ;;  %v1173_v38 = vadd.f32 %v2241_v9, %v1115_v15  ;;  %v2637_v30 = vld [vmem:[%s4457_s3 + $0x8] sm:$0xff]   ;;  %v2638_v33 = vld [vmem:[%s4457_s3 + $0x10] sm:$0xff]  }
 0x18d   : > { %vm1141_vm7 = vcmp.eq.s32.totalorder %v1137_v14, 1  ;;  %vm4722_vm5 = vmmov %vm4716_vm6  ;;  %v2240_v23 = vsel %vm4285_vm15, 1.0, %v2878_v25  ;;  %v2275_v9 = vld [vmem:[%s4458_s4] ss:$0 sm:$0xff] }
 0x18e   : > { %vm4291_vm1 = vmand %vm1130_vm12, %vm4722_vm5  ;;  %v1172_v40 = vadd.f32 %v2240_v23, %v1114_v34 }
 0x18f   : > { %vm1143_vm11 = vmand %vm4725_vm4, %vm1141_vm7  ;;  %v2242_v22 = vsel %vm4291_vm1, 1.0, %v2878_v25 }
 0x190   : > { %vm1145_vm3 = vmand %vm4726_vm14, %vm1141_vm7  ;;  %v2235_v32 = vsel %vm1143_vm11, 1.0, %v2878_v25  ;;  %v1174_v17 = vadd.f32 %v2242_v22, %v1116_v36  ;;  %v1530_v57 = vpop.permute.xlu1 %1529  ;;  %v2658_v36 = vld [vmem:[#allocation7 + $0x30] sm:$0xff]  }
 0x191   : > { %v2237_v0 = vsel %vm1145_vm3, 1.0, %v2878_v25  ;;  %vm1144_vm2 = vmand %vm1124_vm8, %vm1141_vm7  ;;  %v1167_v28 = vadd.f32 %v2235_v32, %v1109_v18  ;;  %vm2879_vm8 = vmmov 0   ;;  %v2650_v18 = vld [vmem:[#allocation5 + $0x30] sm:$0xff]  }
 0x192   : > { %v2236_v35 = vsel %vm1144_vm2, 1.0, %v2878_v25  ;;  %vm1146_vm13 = vmand %vm4727_vm10, %vm1141_vm7  ;;  %v1169_v37 = vadd.f32 %v2237_v0, %v1111_v29  ;;  %v2654_v29 = vld [vmem:[#allocation7 + $0x10] sm:$0xff]  }
 0x193   : > { %v1168_v39 = vadd.f32 %v2236_v35, %v1110_v12  ;;  %v2238_v26 = vsel %vm1146_vm13, 1.0, %v2878_v25  ;;  %v1175_v41 = vpack.c.bf16 %v1171_v27, %v1167_v28  ;;  %v2651_v12 = vld [vmem:[#allocation5 + $0x38] sm:$0xff]  }
 0x194   : > { %v1170_v43 = vadd.f32 %v2238_v26, %v1112_v11  ;;  %v1177_v46 = vpack.c.bf16 %v1173_v38, %v1169_v37  ;;  %v1535_v14 = vpop.permute.xlu1 %1534  ;;  %v2657_v11 = vld [vmem:[#allocation7 + $0x28] sm:$0xff]   ;;  %v2659_v37 = vld [vmem:[#allocation7 + $0x38] sm:$0xff]   ;;  %v2660_v38 = vld [vmem:[#allocation8] sm:$0xff]  }
 0x195   : > { %v1176_v47 = vpack.c.bf16 %v1172_v40, %v1168_v39  ;;  %v2661_v39 = vld [vmem:[#allocation8 + $0x8] sm:$0xff]   ;;  %v2662_v40 = vld [vmem:[#allocation8 + $0x10] sm:$0xff]   ;;  %v2663_v26 = vld [vmem:[#allocation8 + $0x18] sm:$0xff]  }
 0x196   : > { %v1178_v21 = vpack.c.bf16 %v1174_v17, %v1170_v43  ;;  %v2665_v43 = vld [vmem:[#allocation8 + $0x28] sm:$0xff]   ;;  %v2284_v17 = vld [vmem:[%s4460_s6] ss:$0 sm:$0xff] }
 0x197   : > { %1467 = vmatprep.mubr.bf16.mxu0 %v1176_v47 }
 0x198   : > { %1508 = vmatprep.mubr.bf16.mxu1 %v1178_v21  ;;  %1468 = vmatmul.mubr.bf16.vlgmr.msra.gmra.mrb[0].mxu0 %v1175_v41  ;;  %v2664_v41 = vld [vmem:[#allocation8 + $0x20] sm:$0xff]  }
 0x199   : > { %1509 = vmatmul.mubr.bf16.vlgmr.msra.gmra.mrb[0].mxu1 %v1177_v46  ;;  %2398 = vmatpush3.bf16.msra.mxu0 %v2636_v48 }
 0x19a   : > { %2399 = vmatprep.subr.bf16.mxu0 %v2878_v25  ;;  %2413 = vmatprep.mubr.msk.bf16.mxu0 %vm2879_vm8, %v2878_v25 }
 0x19b   : > { %2433 = vmatprep.mubr.msk.bf16.mxu1 %vm2879_vm8, %v2878_v25  ;;  %2418 = vmatpush3.bf16.msra.mxu1 %v2644_v55  ;;  %v2293_v55 = vld [vmem:[%s4462_s8] ss:$0 sm:$0xff] }
 0x19c   : > { %2419 = vmatprep.subr.bf16.mxu1 %v2878_v25 }
 0x19d   : > { %2400 = vmatpush3.bf16.msra.mxu0 %v2637_v30 }
 0x19e   : > { %2401 = vmatprep.subr.bf16.mxu0 %v2878_v25 }
 0x19f   : > { %2420 = vmatpush3.bf16.msra.mxu1 %v2645_v56 }
 0x1a0   : > { %2421 = vmatprep.subr.bf16.mxu1 %v2878_v25 }
 0x1a1   : > { %2402 = vmatpush3.bf16.msra.mxu0 %v2638_v33 }
 0x1a2   : > { %2403 = vmatprep.subr.bf16.mxu0 %v2878_v25 }
 0x1a3   : > { %2422 = vmatpush3.bf16.msra.mxu1 %v2646_v44 }
 0x1a4   : > { %2423 = vmatprep.subr.bf16.mxu1 %v2878_v25 }
 0x1a5   : > { %2404 = vmatpush3.bf16.msra.mxu0 %v2639_v49 }
 0x1a6   : > { %2405 = vmatprep.subr.bf16.mxu0 %v2878_v25 }
 0x1a7   : > { %2424 = vmatpush3.bf16.msra.mxu1 %v2647_v60 }
 0x1a8   : > { %2425 = vmatprep.subr.bf16.mxu1 %v2878_v25 }
 0x1a9   : > { %2406 = vmatpush3.bf16.msra.mxu0 %v2640_v50 }
 0x1aa   : > { %2407 = vmatprep.subr.bf16.mxu0 %v2878_v25 }
 0x1ab   : > { %2426 = vmatpush3.bf16.msra.mxu1 %v2648_v61 }
 0x1ac   : > { %2427 = vmatprep.subr.bf16.mxu1 %v2878_v25 }
 0x1ad   : > { %2408 = vmatpush3.bf16.msra.mxu0 %v2641_v53 }
 0x1ae   : > { %2409 = vmatprep.subr.bf16.mxu0 %v2878_v25 }
 0x1af   : > { %2428 = vmatpush3.bf16.msra.mxu1 %v2649_v54 }
 0x1b0   : > { %2429 = vmatprep.subr.bf16.mxu1 %v2878_v25 }
 0x1b1   : > { %2410 = vmatpush3.bf16.msra.mxu0 %v2642_v45  ;;  %v2666_v45 = vld [vmem:[#allocation8 + $0x30] sm:$0xff]  }
 0x1b2   : > { %2411 = vmatprep.subr.bf16.mxu0 %v2878_v25 }
 0x1b3   : > { %2430 = vmatpush3.bf16.msra.mxu1 %v2650_v18 }
 0x1b4   : > { %2431 = vmatprep.subr.bf16.mxu1 %v2878_v25 }
 0x1b5   : > { %2412 = vmatpush3.bf16.msra.mxu0 %v2643_v52  ;;  %v2667_v52 = vld [vmem:[#allocation8 + $0x38] sm:$0xff]  }
 0x1b6   : > { %2437 = vmatprep.subr.bf16.mxu0 %v2878_v25 }
 0x1b7   : > { %2432 = vmatpush3.bf16.msra.mxu1 %v2651_v12 }
 0x1b8   : > { %2457 = vmatprep.subr.bf16.mxu1 %v2878_v25 }
 0x26b   : > { %v2333_v42 = vpop.f32.mrb[0].mxu0 }
 0x26c   : > { %v2355_v4 = vpop.f32.mrb[0].mxu1  ;;  %v2334_v5 = vpop.f32.mrb[1].mxu0 }
 0x26d   : > { %v2335_v24 = vadd.f32 %v2334_v5, %v2333_v42  ;;  %v2356_v51 = vpop.f32.mrb[1].mxu1  ;;  %v2336_v1 = vpop.f32.mrb[2].mxu0 }
 0x26e   : > { %v2357_v58 = vadd.f32 %v2356_v51, %v2355_v4  ;;  %v2358_v8 = vpop.f32.mrb[2].mxu1  ;;  %v2337_v10 = vpop.f32.mrb[3].mxu0 }
 0x26f   : > { %v2338_v62 = vadd.f32 %v2337_v10, %v2336_v1  ;;  %v2359_v63 = vpop.f32.mrb[3].mxu1 }
 0x270   : > { %v1511_v13 = vadd.f32 %v2357_v58, %v2335_v24  ;;  %v2360_v2 = vadd.f32 %v2359_v63, %v2358_v8 }
 0x272   : > { %v1514_v3 = vadd.f32 %v2360_v2, %v2338_v62  ;;  %v1537_v7 = vmul.f32 %v1530_v57, %v1511_v13 }
 0x274   : > { %v1538_v6 = vmul.f32 %v1535_v14, %v1514_v3 }
 0x276   : > { %v1539_v16 = vpack.c.bf16 %v1538_v6, %v1537_v7 }
 0x278   : > { %2414 = vmatmul.mubr.bf16.vlgmr.msra.gmra.mrb[4].mxu0 %v1539_v16 }
 0x279   : > { %2453 = vmatprep.mubr.msk.bf16.mxu0 %vm2879_vm8, %v2878_v25  ;;  %2438 = vmatpush3.bf16.msra.mxu0 %v2652_v19 }
 0x27a   : > { %2439 = vmatprep.subr.bf16.mxu0 %v2878_v25 }
 0x27d   : > { %2440 = vmatpush3.bf16.msra.mxu0 %v2653_v20 }
 0x27e   : > { %2441 = vmatprep.subr.bf16.mxu0 %v2878_v25 }
 0x281   : > { %2442 = vmatpush3.bf16.msra.mxu0 %v2654_v29 }
 0x282   : > { %2443 = vmatprep.subr.bf16.mxu0 %v2878_v25 }
 0x285   : > { %2444 = vmatpush3.bf16.msra.mxu0 %v2655_v59 }
 0x286   : > { %2445 = vmatprep.subr.bf16.mxu0 %v2878_v25 }
 0x289   : > { %2446 = vmatpush3.bf16.msra.mxu0 %v2656_v31 }
 0x28a   : > { %2447 = vmatprep.subr.bf16.mxu0 %v2878_v25 }
 0x28d   : > { %2448 = vmatpush3.bf16.msra.mxu0 %v2657_v11 }
 0x28e   : > { %2449 = vmatprep.subr.bf16.mxu0 %v2878_v25 }
 0x291   : > { %2450 = vmatpush3.bf16.msra.mxu0 %v2658_v36 }
 0x292   : > { %2451 = vmatprep.subr.bf16.mxu0 %v2878_v25 }
 0x295   : > { %2452 = vmatpush3.bf16.msra.mxu0 %v2659_v37 }
 0x34b   : > { %v1645_v15 = vpop.f32.mrb[4].mxu0 }
 0x34c   : > { %v1646_v32 = vadd.f32 %v2275_v9, %v1645_v15  ;;  %v2415_v34 = vpop.f32.mrb[5].mxu0 }
 0x34d   : > { %v1648_v23 = vpop.f32.mrb[6].mxu0 }
 0x34e   : > { %v1649_v0 = vadd.f32 %v2275_v9, %v1648_v23  ;;  %v2416_v22 = vpop.f32.mrb[7].mxu0  ;;  %v1652_v28 = vmax.f32 %v1646_v32, 0.0 }
 0x350   : > { %v1653_v27 = vmax.f32 %v1649_v0, 0.0 }
 0x352   : > { %v1654_v35 = vpack.c.bf16 %v1653_v27, %v1652_v28 }
 0x354   : > { %2434 = vmatmul.mubr.bf16.vlgmr.msra.gmra.mrb[4].mxu1 %v1654_v35 }
 0x355   : > { %2473 = vmatprep.mubr.msk.bf16.mxu1 %vm2879_vm8, %v2878_v25  ;;  %2458 = vmatpush3.bf16.msra.mxu1 %v2660_v38 }
 0x356   : > { %2459 = vmatprep.subr.bf16.mxu1 %v2878_v25 }
 0x359   : > { %2460 = vmatpush3.bf16.msra.mxu1 %v2661_v39 }
 0x35a   : > { %2461 = vmatprep.subr.bf16.mxu1 %v2878_v25 }
 0x35d   : > { %2462 = vmatpush3.bf16.msra.mxu1 %v2662_v40 }
 0x35e   : > { %2463 = vmatprep.subr.bf16.mxu1 %v2878_v25 }
 0x361   : > { %2464 = vmatpush3.bf16.msra.mxu1 %v2663_v26 }
 0x362   : > { %2465 = vmatprep.subr.bf16.mxu1 %v2878_v25 }
 0x365   : > { %2466 = vmatpush3.bf16.msra.mxu1 %v2664_v41 }
 0x366   : > { %2467 = vmatprep.subr.bf16.mxu1 %v2878_v25 }
 0x369   : > { %2468 = vmatpush3.bf16.msra.mxu1 %v2665_v43 }
 0x36a   : > { %2469 = vmatprep.subr.bf16.mxu1 %v2878_v25 }
 0x36d   : > { %2470 = vmatpush3.bf16.msra.mxu1 %v2666_v45 }
 0x36e   : > { %2471 = vmatprep.subr.bf16.mxu1 %v2878_v25  ;;  %v2302_v25 = vld [vmem:[%s4464_s10] ss:$0 sm:$0xff] }
 0x371   : > { %2472 = vmatpush3.bf16.msra.mxu1 %v2667_v52 }
 0x427   : > { %v1760_v46 = vpop.f32.mrb[4].mxu1 }
 0x428   : > { %v1761_v47 = vadd.f32 %v2284_v17, %v1760_v46  ;;  %v2435_v48 = vpop.f32.mrb[5].mxu1 }
 0x429   : > { %v1763_v21 = vpop.f32.mrb[6].mxu1 }
 0x42a   : > { %v1764_v30 = vadd.f32 %v2284_v17, %v1763_v21  ;;  %v2436_v33 = vpop.f32.mrb[7].mxu1  ;;  %v1767_v49 = vmax.f32 %v1761_v47, 0.0 }
 0x42c   : > { %v1768_v50 = vmax.f32 %v1764_v30, 0.0 }
 0x42e   : > { %v1769_v53 = vpack.c.bf16 %v1768_v50, %v1767_v49 }
 0x430   : > { %2454 = vmatmul.mubr.bf16.vlgmr.msra.gmra.mrb[8].mxu0 %v1769_v53 }
 0x503   : > { %v1875_v56 = vpop.f32.mrb[8].mxu0 }
 0x504   : > { %v1876_v44 = vadd.f32 %v2293_v55, %v1875_v56  ;;  %v2455_v60 = vpop.f32.mrb[9].mxu0 }
 0x505   : > { %v1878_v61 = vpop.f32.mrb[10].mxu0 }
 0x506   : > { %v1879_v54 = vadd.f32 %v2293_v55, %v1878_v61  ;;  %v2456_v57 = vpop.f32.mrb[11].mxu0  ;;  %v1882_v42 = vmax.f32 %v1876_v44, 0.0 }
 0x508   : > { %v1883_v4 = vmax.f32 %v1879_v54, 0.0 }
 0x50a   : > { %v1884_v5 = vpack.c.bf16 %v1883_v4, %v1882_v42 }
 0x50c   : > { %2474 = vmatmul.mubr.bf16.vlgmr.msra.gmra.mrb[8].mxu1 %v1884_v5 }
 0x5df   : > { %v1990_v24 = vpop.f32.mrb[8].mxu1 }
 0x5e0   : > { %v1991_v51 = vadd.f32 %v2302_v25, %v1990_v24  ;;  %v2475_v1 = vpop.f32.mrb[9].mxu1 }
 0x5e1   : > { %v1993_v58 = vpop.f32.mrb[10].mxu1 }
 0x5e2   : > { %v1997_v8 = vmax.f32 %v1991_v51, 0.0  ;;  %v1994_v10 = vadd.f32 %v2302_v25, %v1993_v58  ;;  %v2476_v62 = vpop.f32.mrb[11].mxu1 }
 0x5e4   : > { %1999 = vst [vmem:[%s455_s23] sm:$0xff] %v1997_v8  ;;  %v1998_v63 = vmax.f32 %v1994_v10, 0.0 }
 0x5e6   : > { %2000 = vst [vmem:[%s455_s23 + $0x8] sm:$0xff] %v1998_v63 }
 0x5e7   : > { %2797 = shalt.err (!%p2794_p0)
}
 0x5e8   : > { %s2798_s19 = scalar_lea.hbm %s4411_s20, 256  ;;  %s2802_s15 = scalar_lea.hbm %s4729_s28, 512 }
 0x5e9   : > { %p2799_p10 = scmp.ne.s32.totalorder %s4411_s20, %s2798_s19  ;;  %p2803_p4 = scmp.lt.u32.totalorder %s4411_s20, %s4729_s28 }
 0x5ea   : > { %p2804_p12 = scmp.lt.u32.totalorder %s2802_s15, %s2798_s19  ;;  %p2806_p8 = scmp.lt.u32.totalorder %s2798_s19, %s4411_s20 }
 0x5eb   : > { %p2800_p2 = pnand %p2799_p10, %p4730_p11 }
 0x5ec   : > { %p2805_p7 = por %p2804_p12, %p2803_p4 }
 0x5ed   : > { %p2801_p3 = pneg %p2800_p2 }
 0x5ee   : > { %p2807_p13 = por %p2806_p8, %p2805_p7 }
 0x5f0   : > { %p2808_p1 = pnand %p2807_p13, %p2801_p3 }
 0x5f2   : > { %2811 = shalt.err (!%p2808_p1)
}
 0x5f3   : > { %s2881_s13 = smov 128   ;;  %s2882_s24 = smov 8  }
 0x5f4   : > { %2493 = dma.vmem_to_hbm [thread:$0]  (%p4730_p11), %s4406_s29, 256, %s4411_s20, %s4413_s25, %s2881_s13, %s2881_s13, %s2882_s24  }
 0x5f5 PF: > { %s4731_s26 = sld [smem:[#allocation17_spill]]  ;;  %s4732_s17 = sld [smem:[#allocation15_spill]] }
 0x5f6   : > { %s4733_s30 = sld [smem:[#allocation20_spill]] }
 0x5fb   : > { %p2520_p6 = scmp.ge.s32.totalorder %s4731_s26, 2  ;;  %s2030_s21 = sand.u32 1, %s4732_s17  }
 0x5fc   : > { %p4734_p9 = scmp.ne.s32.totalorder %s4733_s30, 0  ;;  %s2031_s14 = scalar_lea.sflag [#allocation4], %s2030_s21 }
 0x5fe   : > { %p2509_p5 = pnand %p2520_p6, %p4734_p9 }
 0x600   : > { %2841 = dma.done.wait (!%p2509_p5), %s2031_s14, 256  }
 0x601   : > { %2843 = vsyncadd (!%p2509_p5), %s2031_s14, 4294967040  ;;  %s4735_s20 = sld [smem:[#allocation18_spill]]  ;;  %s4736_s16 = sld [smem:[#allocation16_spill]] }
 0x602   : > { %s4737_s19 = sld [smem:[#allocation19_spill]]  ;;  %s4738_s17 = smov %s2850_s18 }
 0x607   : > { %p24_p0 = scmp.ge.s32.totalorder %s4735_s20, 4   ;;  %s4739_s18 = smov %s4736_s16 }
 0x609   :  { %26 = sbr.rel (!%p24_p0) target bundleno = 8 (0x8), region = 119 }
 0x610   :  { %2036 = vsyncpa [#allocation3], 1 }
 0x611   :  { %2038 = vsyncpa [#allocation3 + $0x1], 1 }
 0x612   :  { %2039 = vsyncpa [#allocation6], 1 }
 0x613   :  { %2040 = vsyncpa [#allocation9], 1 }
 0x614   :  { %2041 = vsyncpa [#allocation4], 1 }
 0x615   :  { %2043 = vsyncpa [#allocation4 + $0x1], 1 }

</bundles_post_ra>
